<compile_context>
chip_gen: v7x
topology: tpu7x:2x2x1
jax: 0.10.0
libtpu: 0.0.40
codegen_flags: <defaults>
</compile_context>

<pallas_src>
import functools

import jax
import jax.numpy as jnp
from jax import lax
from jax.experimental import pallas as pl
from jax.experimental.pallas import tpu as pltpu


def _round_up(x, m):
    return (x + m - 1) // m * m


# ---------------------------------------------------------------------------
# Single fused kernel: feature transform + sampled-row aggregation + head.
# ---------------------------------------------------------------------------
def _dgi_kernel(x_ref, w_ref, a_ref, b_ref, wbt_ref, alpha_ref, bb_ref,
                out_ref, xw_ref, h_ref, *, s_true, h_pad):
    # (1) Fused per-branch feature transform via block-diagonal W_cat:
    #     XW_cat = [X1 | X2] @ [[W, 0], [0, W]]  -> (n_pad, 2*h_pad) f32 (VMEM).
    xw_ref[...] = jnp.dot(x_ref[...], w_ref[...],
                          preferred_element_type=jnp.float32)

    # (2) Both-branch aggregation on the sampled rows + bias + PReLU.
    pre = jnp.dot(a_ref[...], xw_ref[...],
                  preferred_element_type=jnp.float32) + b_ref[...]
    alpha = alpha_ref[0, 0]                                   # SMEM scalar
    hcat = jnp.where(pre > 0, pre, alpha * pre)               # PReLU (f32)
    # Zero the padded sample rows so the readout mean / scores ignore them.
    row = lax.broadcasted_iota(jnp.int32, hcat.shape, 0)
    h_ref[...] = jnp.where(row < s_true, hcat, 0.0)

    # (3) AvgReadout + sigmoid + bilinear discriminator head.
    h1 = h_ref[:, :h_pad]                                     # (s_pad, h_pad)
    h2 = h_ref[:, h_pad:]
    c = jax.nn.sigmoid(jnp.sum(h1, axis=0, keepdims=True) * (1.0 / s_true))
    v = jnp.dot(c, wbt_ref[...], preferred_element_type=jnp.float32)  # (1, h_pad)
    bb = bb_ref[0, 0]                                         # SMEM scalar
    dn = (((1,), (1,)), ((), ()))       # contract last dims: v @ h_i.T (no transpose)
    sc1 = lax.dot_general(v, h1, dn, preferred_element_type=jnp.float32) + bb
    sc2 = lax.dot_general(v, h2, dn, preferred_element_type=jnp.float32) + bb
    out_ref[...] = jnp.concatenate([sc1, sc2], axis=0)        # (2, s_pad) lane-dense


def _dgi_call(x_cat, w_blk, a_s, b_cat, wbt, alpha, bb, *, s_true, h_pad):
    n_pad, two_f = x_cat.shape
    s_pad = a_s.shape[0]
    two_h = w_blk.shape[1]
    kernel = functools.partial(_dgi_kernel, s_true=s_true, h_pad=h_pad)
    return pl.pallas_call(
        kernel,
        out_shape=jax.ShapeDtypeStruct((2, s_pad), jnp.float32),
        grid=(1,),
        in_specs=[
            pl.BlockSpec((n_pad, two_f), lambda i: (0, 0)),        # X_cat (bf16)
            pl.BlockSpec((two_f, two_h), lambda i: (0, 0)),        # block-diag W_cat
            pl.BlockSpec((s_pad, n_pad), lambda i: (0, 0)),        # A[idx] rows (f32)
            pl.BlockSpec((1, two_h), lambda i: (0, 0)),            # bias (f32)
            pl.BlockSpec((h_pad, h_pad), lambda i: (0, 0)),        # Wb^T (f32)
            pl.BlockSpec(memory_space=pltpu.MemorySpace.SMEM),     # PReLU slope
            pl.BlockSpec(memory_space=pltpu.MemorySpace.SMEM),     # bilinear bias
        ],
        out_specs=pl.BlockSpec((2, s_pad), lambda i: (0, 0)),
        scratch_shapes=[
            pltpu.VMEM((n_pad, two_h), jnp.float32),               # XW_cat (resident)
            pltpu.VMEM((s_pad, two_h), jnp.float32),               # H_s    (resident)
        ],
        compiler_params=pltpu.CompilerParams(
            dimension_semantics=("arbitrary",)),
    )(x_cat, w_blk, a_s, b_cat, wbt, alpha, bb)


# ---------------------------------------------------------------------------
# Full DGISample.forward
# ---------------------------------------------------------------------------
def dgi_forward(seq1, seq2, adj, idx, params, *, dtype=jnp.bfloat16):
    """DGISample forward -> logits of shape [2*S].

    One fused pallas_call; everything (X, A[idx] rows, XW_cat, H_s) is resident
    in VMEM (~1.5 MiB at these sizes, well under the 16/32 MiB scoped defaults
    on v5e/v6e/v7x).  X/W feed the MXU in bf16 with f32 accumulation; the
    adjacency rows and all elementwise/head math stay f32.
    """
    n, f = seq1.shape
    h = params["w"].shape[1]
    s = int(idx.shape[0])

    f_pad = _round_up(f, 64)        # 2*f_pad is a multiple of 128 (full MXU K)
    h_pad = _round_up(h, 128)       # per-branch hidden lane width, full vregs
    s_pad = _round_up(s, 128)
    n_pad = _round_up(n, 128)

    # --- parameter / input padding + dtype casts (pure glue) -----------------
    w = params["w"].astype(dtype)
    w_blk = jnp.zeros((2 * f_pad, 2 * h_pad), dtype)
    w_blk = w_blk.at[:f, :h].set(w)
    w_blk = w_blk.at[f_pad:f_pad + f, h_pad:h_pad + h].set(w)

    x1 = jnp.pad(seq1, ((0, n_pad - n), (0, f_pad - f))).astype(dtype)
    x2 = jnp.pad(seq2, ((0, n_pad - n), (0, f_pad - f))).astype(dtype)
    x_cat = jnp.concatenate([x1, x2], axis=1)                   # (n_pad, 2*f_pad)

    b = params["b"].astype(jnp.float32)
    b_cat = jnp.zeros((1, 2 * h_pad), jnp.float32)
    b_cat = b_cat.at[:, :h].set(b).at[:, h_pad:h_pad + h].set(b)

    # v = Wb @ c computed in-kernel as a row vector c @ Wb^T; padded rows/cols
    # of Wb^T are zero so the sigmoid(0)=0.5 padded entries of c never leak.
    wbt = jnp.zeros((h_pad, h_pad), jnp.float32)
    wbt = wbt.at[:h, :h].set(params["wb"].astype(jnp.float32).T)

    # Gather only the sampled adjacency rows (f32, small): for the one-layer
    # encoder GCN(X, A)[idx] == PReLU(A[idx] @ XW + b), so the full [N, H]
    # hidden state is never built.
    a_s = jnp.pad(adj[idx], ((0, s_pad - s), (0, n_pad - n)))   # (s_pad, n_pad) f32

    scores = _dgi_call(x_cat, w_blk, a_s, b_cat, wbt,
                       params["alpha"].astype(jnp.float32),
                       params["bb"].astype(jnp.float32),
                       s_true=s, h_pad=h_pad)                   # (2, s_pad)

    # torch.cat((sc_1, sc_2)) -> [2*S]
    return jnp.concatenate([scores[0, :s], scores[1, :s]], axis=0)


def dgi_reference(seq1, seq2, adj, idx, params, *, dtype=jnp.bfloat16):
    """Plain-JAX reference mirroring the bf16-feature / f32-accumulate dataflow."""
    w = params["w"].astype(dtype)
    xw1 = jnp.dot(seq1.astype(dtype), w, preferred_element_type=jnp.float32)
    xw2 = jnp.dot(seq2.astype(dtype), w, preferred_element_type=jnp.float32)
    a_s = adj[idx]
    alpha = params["alpha"][0, 0]

    def gcn_rows(xw):
        pre = jnp.dot(a_s, xw, preferred_element_type=jnp.float32) + params["b"]
        return jnp.where(pre > 0, pre, alpha * pre)

    h1 = gcn_rows(xw1)
    h2 = gcn_rows(xw2)
    c = jax.nn.sigmoid(jnp.mean(h1, axis=0))
    v = params["wb"] @ c
    sc1 = h1 @ v + params["bb"][0, 0]
    sc2 = h2 @ v + params["bb"][0, 0]
    return jnp.concatenate([sc1, sc2])


if __name__ == "__main__":
    key = jax.random.PRNGKey(0)
    k_feat, k_adj, k_perm, k_idx, k_w, k_b, k_wb, k_bb = jax.random.split(key, 8)

    N, F, H, S = 512, 64, 32, 200   # nodes, in-features, nhid, sample_size

    features = jax.random.normal(k_feat, (N, F), dtype=jnp.float32)
    # Row-shuffled (corrupted) features for the negative branch.
    shuf_fts = features[jax.random.permutation(k_perm, N), :]

    # Row-normalized dense adjacency with self loops.
    a_raw = (jax.random.uniform(k_adj, (N, N)) > 0.97).astype(jnp.float32)
    a_raw = jnp.maximum(a_raw, a_raw.T) + jnp.eye(N, dtype=jnp.float32)
    adj = a_raw / jnp.sum(a_raw, axis=1, keepdims=True)

    # Deterministic node sample (stands in for np.random choice w/o replacement).
    idx = jax.random.permutation(k_idx, N)[:S]

    params = {
        "w": jax.random.normal(k_w, (F, H), dtype=jnp.float32) * 0.1,   # GCN weight
        "b": jax.random.normal(k_b, (1, H), dtype=jnp.float32) * 0.1,   # GCN bias
        "alpha": jnp.full((1, 1), 0.25, dtype=jnp.float32),             # PReLU slope
        "wb": jax.random.normal(k_wb, (H, H), dtype=jnp.float32) * 0.1, # Bilinear W
        "bb": jax.random.normal(k_bb, (1, 1), dtype=jnp.float32) * 0.1, # Bilinear b
    }

    logits = jax.block_until_ready(
        dgi_forward(features, shuf_fts, adj, idx, params))
    ref = dgi_reference(features, shuf_fts, adj, idx, params)

    assert logits.shape == (2 * S,)
    max_err = float(jnp.max(jnp.abs(logits - ref)))
    assert jnp.allclose(logits, ref, rtol=2e-3, atol=2e-3), (
        f"mismatch vs reference, max abs err = {max_err:.3e}")

    print("KERNEL_OK")
</pallas_src>

<mosaic_0001>
module attributes {stable_mosaic.version = 11 : i64} {
  func.func @_dgi_kernel(%arg0: i32, %arg1: memref<512x128xbf16, #tpu.memory_space<vmem>>, %arg2: memref<128x256xbf16, #tpu.memory_space<vmem>>, %arg3: memref<256x512xf32, #tpu.memory_space<vmem>>, %arg4: memref<1x256xf32, #tpu.memory_space<vmem>>, %arg5: memref<128x128xf32, #tpu.memory_space<vmem>>, %arg6: memref<1x1xf32, #tpu.memory_space<smem>>, %arg7: memref<1x1xf32, #tpu.memory_space<smem>>, %arg8: memref<2x256xf32, #tpu.memory_space<vmem>>, %arg9: memref<512x256xf32, #tpu.memory_space<vmem>>, %arg10: memref<256x256xf32, #tpu.memory_space<vmem>>) attributes {dimension_semantics = [#tpu.dimension_semantics<arbitrary>], iteration_bounds = array<i64: 1>, scalar_prefetch = 0 : i64, scratch_operands = 2 : i64, tpu.core_type = #tpu.core_type<tc>, window_params = [{pipeline_mode = #tpu.pipeline_mode<synchronous>, transform_indices = @transform_0, window_bounds = array<i64: 512, 128>}, {pipeline_mode = #tpu.pipeline_mode<synchronous>, transform_indices = @transform_1, window_bounds = array<i64: 128, 256>}, {pipeline_mode = #tpu.pipeline_mode<synchronous>, transform_indices = @transform_2, window_bounds = array<i64: 256, 512>}, {pipeline_mode = #tpu.pipeline_mode<synchronous>, transform_indices = @transform_3, window_bounds = array<i64: 1, 256>}, {pipeline_mode = #tpu.pipeline_mode<synchronous>, transform_indices = @transform_4, window_bounds = array<i64: 128, 128>}, {transform_indices = @transform_5, window_bounds = array<i64: 1, 1>}, {transform_indices = @transform_6, window_bounds = array<i64: 1, 1>}, {pipeline_mode = #tpu.pipeline_mode<synchronous>, transform_indices = @transform_7, window_bounds = array<i64: 2, 256>}]} {
    %c0 = arith.constant 0 : index
    %c0_0 = arith.constant 0 : index
    %0 = vector.load %arg1[%c0, %c0_0] : memref<512x128xbf16, #tpu.memory_space<vmem>>, vector<512x128xbf16>
    %c0_1 = arith.constant 0 : index
    %c0_2 = arith.constant 0 : index
    %1 = vector.load %arg2[%c0_1, %c0_2] : memref<128x256xbf16, #tpu.memory_space<vmem>>, vector<128x256xbf16>
    %cst = arith.constant dense<0.000000e+00> : vector<512x256xf32>
    %2 = tpu.matmul %0, %1, %cst {dimension_numbers = #tpu.dot_dimension_numbers<[1], [0], [0], [1], [0, 0, 1, 1], [], []>} : vector<512x128xbf16>, vector<128x256xbf16>, vector<512x256xf32> -> vector<512x256xf32>
    %c0_3 = arith.constant 0 : index
    %c0_4 = arith.constant 0 : index
    %3 = vector.load %arg9[%c0_3, %c0_4] : memref<512x256xf32, #tpu.memory_space<vmem>>, vector<512x256xf32>
    tpu.vector_store %arg9[%c0_3, %c0_4], %2 {strides = array<i32>} : memref<512x256xf32, #tpu.memory_space<vmem>>, vector<512x256xf32>,
    %c0_5 = arith.constant 0 : index
    %c0_6 = arith.constant 0 : index
    %4 = vector.load %arg3[%c0_5, %c0_6] : memref<256x512xf32, #tpu.memory_space<vmem>>, vector<256x512xf32>
    %c0_7 = arith.constant 0 : index
    %c0_8 = arith.constant 0 : index
    %5 = vector.load %arg9[%c0_7, %c0_8] : memref<512x256xf32, #tpu.memory_space<vmem>>, vector<512x256xf32>
    %cst_9 = arith.constant dense<0.000000e+00> : vector<256x256xf32>
    %6 = tpu.matmul %4, %5, %cst_9 {dimension_numbers = #tpu.dot_dimension_numbers<[1], [0], [0], [1], [0, 0, 1, 1], [], []>} : vector<256x512xf32>, vector<512x256xf32>, vector<256x256xf32> -> vector<256x256xf32>
    %c0_10 = arith.constant 0 : index
    %c0_11 = arith.constant 0 : index
    %7 = vector.load %arg4[%c0_10, %c0_11] : memref<1x256xf32, #tpu.memory_space<vmem>>, vector<1x256xf32>
    %8 = vector.broadcast %7 : vector<1x256xf32> to vector<256x256xf32>
    %9 = arith.addf %6, %8 : vector<256x256xf32>
    %c0_12 = arith.constant 0 : index
    %c0_13 = arith.constant 0 : index
    %10 = memref.load %arg6[%c0_12, %c0_13] : memref<1x1xf32, #tpu.memory_space<smem>>
    %cst_14 = arith.constant 0.000000e+00 : f32
    %11 = vector.broadcast %cst_14 : f32 to vector<256x256xf32>
    %12 = arith.cmpf ogt, %9, %11 : vector<256x256xf32>
    %13 = vector.broadcast %10 : f32 to vector<256x256xf32>
    %14 = arith.mulf %13, %9 : vector<256x256xf32>
    %15 = arith.select %12, %9, %14 : vector<256x256xi1>, vector<256x256xf32>
    %16 = tpu.iota {dimensions = array<i32: 0>} : vector<256x256xi32>
    %c200_i32 = arith.constant 200 : i32
    %17 = vector.broadcast %c200_i32 : i32 to vector<256x256xi32>
    %18 = arith.cmpi slt, %16, %17 : vector<256x256xi32>
    %cst_15 = arith.constant 0.000000e+00 : f32
    %19 = vector.broadcast %cst_15 : f32 to vector<256x256xf32>
    %20 = arith.select %18, %15, %19 : vector<256x256xi1>, vector<256x256xf32>
    %c0_16 = arith.constant 0 : index
    %c0_17 = arith.constant 0 : index
    %21 = vector.load %arg10[%c0_16, %c0_17] : memref<256x256xf32, #tpu.memory_space<vmem>>, vector<256x256xf32>
    tpu.vector_store %arg10[%c0_16, %c0_17], %20 {strides = array<i32>} : memref<256x256xf32, #tpu.memory_space<vmem>>, vector<256x256xf32>,
    %c0_18 = arith.constant 0 : index
    %c0_19 = arith.constant 0 : index
    %22 = vector.load %arg10[%c0_18, %c0_19] : memref<256x256xf32, #tpu.memory_space<vmem>>, vector<256x128xf32>
    %c0_20 = arith.constant 0 : index
    %c128 = arith.constant 128 : index
    %23 = vector.load %arg10[%c0_20, %c128] : memref<256x256xf32, #tpu.memory_space<vmem>>, vector<256x128xf32>
    %cst_21 = arith.constant dense<0.000000e+00> : vector<128xf32>
    %24 = vector.multi_reduction <add>, %22, %cst_21 [0] : vector<256x128xf32> to vector<128xf32>
    %25 = vector.shape_cast %24 : vector<128xf32> to vector<1x128xf32>
    %cst_22 = arith.constant 5.000000e-03 : f32
    %26 = vector.broadcast %cst_22 : f32 to vector<1x128xf32>
    %27 = arith.mulf %25, %26 : vector<1x128xf32>
    %28 = arith.negf %27 : vector<1x128xf32>
    %29 = math.exp %28 : vector<1x128xf32>
    %cst_23 = arith.constant 1.000000e+00 : f32
    %30 = vector.broadcast %cst_23 : f32 to vector<1x128xf32>
    %31 = arith.addf %30, %29 : vector<1x128xf32>
    %32 = arith.divf %30, %31 : vector<1x128xf32>
    %c0_24 = arith.constant 0 : index
    %c0_25 = arith.constant 0 : index
    %33 = vector.load %arg5[%c0_24, %c0_25] : memref<128x128xf32, #tpu.memory_space<vmem>>, vector<128x128xf32>
    %cst_26 = arith.constant dense<0.000000e+00> : vector<1x128xf32>
    %34 = tpu.matmul %32, %33, %cst_26 {dimension_numbers = #tpu.dot_dimension_numbers<[1], [0], [0], [1], [0, 0, 1, 1], [], []>} : vector<1x128xf32>, vector<128x128xf32>, vector<1x128xf32> -> vector<1x128xf32>
    %c0_27 = arith.constant 0 : index
    %c0_28 = arith.constant 0 : index
    %35 = memref.load %arg7[%c0_27, %c0_28] : memref<1x1xf32, #tpu.memory_space<smem>>
    %cst_29 = arith.constant dense<0.000000e+00> : vector<1x256xf32>
    %36 = tpu.matmul %34, %22, %cst_29 {dimension_numbers = #tpu.dot_dimension_numbers<[1], [1], [0], [0], [0, 0, 1, 0], [], []>} : vector<1x128xf32>, vector<256x128xf32>, vector<1x256xf32> -> vector<1x256xf32>
    %37 = vector.broadcast %35 : f32 to vector<1x256xf32>
    %38 = arith.addf %36, %37 : vector<1x256xf32>
    %cst_30 = arith.constant dense<0.000000e+00> : vector<1x256xf32>
    %39 = tpu.matmul %34, %23, %cst_30 {dimension_numbers = #tpu.dot_dimension_numbers<[1], [1], [0], [0], [0, 0, 1, 0], [], []>} : vector<1x128xf32>, vector<256x128xf32>, vector<1x256xf32> -> vector<1x256xf32>
    %40 = vector.broadcast %35 : f32 to vector<1x256xf32>
    %41 = arith.addf %39, %40 : vector<1x256xf32>
    %42 = tpu.concatenate %38, %41 in 0 : vector<1x256xf32>, vector<1x256xf32> -> vector<2x256xf32>
    %c0_31 = arith.constant 0 : index
    %c0_32 = arith.constant 0 : index
    %43 = vector.load %arg8[%c0_31, %c0_32] : memref<2x256xf32, #tpu.memory_space<vmem>>, vector<2x256xf32>
    tpu.vector_store %arg8[%c0_31, %c0_32], %42 {strides = array<i32>} : memref<2x256xf32, #tpu.memory_space<vmem>>, vector<2x256xf32>,
    return
  }
  func.func @transform_0(%arg0: i32) -> (i32, i32) {
    %c0_i32 = arith.constant 0 : i32
    %c0_i32_0 = arith.constant 0 : i32
    %c0_i32_1 = arith.constant 0 : i32
    return %c0_i32, %c0_i32_0 : i32, i32
  }
  func.func @transform_1(%arg0: i32) -> (i32, i32) {
    %c0_i32 = arith.constant 0 : i32
    %c0_i32_0 = arith.constant 0 : i32
    %c0_i32_1 = arith.constant 0 : i32
    return %c0_i32, %c0_i32_0 : i32, i32
  }
  func.func @transform_2(%arg0: i32) -> (i32, i32) {
    %c0_i32 = arith.constant 0 : i32
    %c0_i32_0 = arith.constant 0 : i32
    %c0_i32_1 = arith.constant 0 : i32
    return %c0_i32, %c0_i32_0 : i32, i32
  }
  func.func @transform_3(%arg0: i32) -> (i32, i32) {
    %c0_i32 = arith.constant 0 : i32
    %c0_i32_0 = arith.constant 0 : i32
    %c0_i32_1 = arith.constant 0 : i32
    return %c0_i32, %c0_i32_0 : i32, i32
  }
  func.func @transform_4(%arg0: i32) -> (i32, i32) {
    %c0_i32 = arith.constant 0 : i32
    %c0_i32_0 = arith.constant 0 : i32
    %c0_i32_1 = arith.constant 0 : i32
    return %c0_i32, %c0_i32_0 : i32, i32
  }
  func.func @transform_5(%arg0: i32) -> (i32, i32) {
    %c0_i32 = arith.constant 0 : i32
    %c0_i32_0 = arith.constant 0 : i32
    %c0_i32_1 = arith.constant 0 : i32
    return %c0_i32, %c0_i32_0 : i32, i32
  }
  func.func @transform_6(%arg0: i32) -> (i32, i32) {
    %c0_i32 = arith.constant 0 : i32
    %c0_i32_0 = arith.constant 0 : i32
    %c0_i32_1 = arith.constant 0 : i32
    return %c0_i32, %c0_i32_0 : i32, i32
  }
  func.func @transform_7(%arg0: i32) -> (i32, i32) {
    %c0_i32 = arith.constant 0 : i32
    %c0_i32_0 = arith.constant 0 : i32
    %c0_i32_1 = arith.constant 0 : i32
    return %c0_i32, %c0_i32_0 : i32, i32
  }
}

</mosaic_0001>

<bundles_post_ra>
// kernel: tpu_custom_call.1
= control target key start
LH: loop header
LB: loop body
LE: loop exit
PB: predicated region body
PF: predicated region fallthrough
CT: control target
= control target key end

     0   :  { %14 = vsyncpa [#allocation7], 0  ;;  %s3498_s0 = inlined_call_operand.hbm [shape: bf16[512,128], index: 0, kind: input, shape index: {}]   ;;  %s3499_s1 = inlined_call_operand.hbm [shape: bf16[128,256], index: 1, kind: input, shape index: {}]   ;;  %s3500_s2 = inlined_call_operand.hbm [shape: f32[256,512], index: 2, kind: input, shape index: {}]   ;;  %s3501_s3 = inlined_call_operand.vmem [shape: f32[1,256], index: 3, kind: input, shape index: {}]   ;;  %s3502_s4 = inlined_call_operand.hbm [shape: f32[128,128], index: 4, kind: input, shape index: {}]   ;;  %s3503_s5 = inlined_call_operand.<no memory space> [shape: f32[1,1], index: 5, kind: input, shape index: {}]   ;;  %s3504_s6 = inlined_call_operand.<no memory space> [shape: f32[1,1], index: 6, kind: input, shape index: {}]   ;;  %s3505_s7 = inlined_call_operand.hbm [shape: f32[2,256], index: 7, kind: output, shape index: {}]  }
   0x1   :  { %15 = vsyncpa [#allocation10], 0 }
   0x2   :  { %16 = vsyncpa [#allocation13], 0 }
   0x3   :  { %17 = vsyncpa [#allocation8], 0  ;;  %s3082_s24 = smov [#allocation9]   ;;  %s2964_s28 = scalar_lea.hbm %s3499_s1, 2048 }
   0x4   :  { %s35_s25 = sshll.u32 %s3082_s24, 4  ;;  %p2965_p0 = scmp.ne.s32.totalorder %s3499_s1, %s2964_s28  ;;  %s36_s25 = int_to_ptr.vmem [resolvable:$true] %s35_s25 }
   0x5   :  { %p2968_p1 = scmp.lt.u32.totalorder %s2964_s28, %s3499_s1 }
   0x7   :  { %p2970_p2 = pnand %p2968_p1, %p2965_p0 }
   0x9   :  { %2973 = shalt.err (!%p2970_p2)
}
   0xa   :  { %s2974_s10 = scalar_lea.vmem %s36_s25, 2048  ;;  %p2979_p4 = scmp.lt.s32.totalorder %s36_s25, %s36_s25 }
   0xb   :  { %p2975_p3 = scmp.ne.s32.totalorder %s36_s25, %s2974_s10  ;;  %p2980_p5 = scmp.lt.s32.totalorder %s2974_s10, %s2974_s10 }
   0xd   :  { %p2981_p6 = por %p2980_p5, %p2979_p4 }
   0xf   :  { %p2982_p7 = pnand %p2981_p6, %p2975_p3 }
  0x11   :  { %2985 = shalt.err (!%p2982_p7)
}
  0x12   :  { %s3083_s11 = smov 128   ;;  %s3084_s12 = smov 8  }
  0x13   :  { %41 = dma.hbm_to_vmem [thread:$0]  %s3499_s1, 2048, %s36_s25, [#allocation10], %s3083_s11, %s3083_s11, %s3084_s12  }
  0x14   :  { %s3085_s15 = smov [#allocation6]   ;;  %s2986_s19 = scalar_lea.hbm %s3498_s0, 4096 }
  0x15   :  { %s23_s16 = sshll.u32 %s3085_s15, 4  ;;  %p2987_p8 = scmp.ne.s32.totalorder %s3498_s0, %s2986_s19  ;;  %s24_s16 = int_to_ptr.vmem [resolvable:$true] %s23_s16 }
  0x16   :  { %p2990_p9 = scmp.lt.u32.totalorder %s2986_s19, %s3498_s0 }
  0x18   :  { %p2992_p10 = pnand %p2990_p9, %p2987_p8 }
  0x1a   :  { %2995 = shalt.err (!%p2992_p10)
}
  0x1b   :  { %s2996_s24 = scalar_lea.vmem %s24_s16, 4096  ;;  %p3001_p12 = scmp.lt.s32.totalorder %s24_s16, %s24_s16 }
  0x1c   :  { %p2997_p11 = scmp.ne.s32.totalorder %s24_s16, %s2996_s24  ;;  %p3002_p13 = scmp.lt.s32.totalorder %s2996_s24, %s2996_s24 }
  0x1e   :  { %p3003_p0 = por %p3002_p13, %p3001_p12 }
  0x20   :  { %p3004_p1 = pnand %p3003_p0, %p2997_p11 }
  0x22   :  { %3007 = shalt.err (!%p3004_p1)
}
  0x23   :  { %s3086_s1 = smov 64   ;;  %s3087_s25 = smov 4  }
  0x24   :  { %29 = dma.hbm_to_vmem [thread:$0]  %s3498_s0, 4096, %s24_s16, [#allocation7], %s3086_s1, %s3086_s1, %s3087_s25  }
  0x25   :  { %s3088_s28 = smov [#allocation11]   ;;  %s3008_s9 = scalar_lea.hbm %s3500_s2, 16384 }
  0x26   :  { %s47_s29 = sshll.u32 %s3088_s28, 4  ;;  %p3009_p2 = scmp.ne.s32.totalorder %s3500_s2, %s3008_s9  ;;  %s48_s29 = int_to_ptr.vmem [resolvable:$true] %s47_s29 }
  0x27   :  { %p3012_p3 = scmp.lt.u32.totalorder %s3008_s9, %s3500_s2 }
  0x29   :  { %p3014_p4 = pnand %p3012_p3, %p3009_p2 }
  0x2b   :  { %3017 = shalt.err (!%p3014_p4)
}
  0x2c   :  { %s3018_s17 = scalar_lea.vmem %s48_s29, 16384  ;;  %p3023_p6 = scmp.lt.s32.totalorder %s48_s29, %s48_s29 }
  0x2d   :  { %p3019_p5 = scmp.ne.s32.totalorder %s48_s29, %s3018_s17  ;;  %p3024_p7 = scmp.lt.s32.totalorder %s3018_s17, %s3018_s17 }
  0x2f   :  { %p3025_p8 = por %p3024_p7, %p3023_p6 }
  0x31   :  { %p3026_p9 = pnand %p3025_p8, %p3019_p5 }
  0x33   :  { %3029 = shalt.err (!%p3026_p9)
}
  0x34   :  { %s3089_s0 = smov 512   ;;  %s3090_s16 = smov 32  }
  0x35   :  { %53 = dma.hbm_to_vmem [thread:$0]  %s3500_s2, 16384, %s48_s29, [#allocation10], %s3089_s0, %s3089_s0, %s3090_s16  }
  0x36   :  { %s3091_s20 = smov [#allocation12]   ;;  %s3030_s24 = scalar_lea.hbm %s3502_s4, 2048 }
  0x37   :  { %s61_s21 = sshll.u32 %s3091_s20, 4  ;;  %p3031_p10 = scmp.ne.s32.totalorder %s3502_s4, %s3030_s24  ;;  %s62_s21 = int_to_ptr.vmem [resolvable:$true] %s61_s21 }
  0x38   :  { %p3034_p11 = scmp.lt.u32.totalorder %s3030_s24, %s3502_s4 }
  0x3a   :  { %p3036_p12 = pnand %p3034_p11, %p3031_p10 }
  0x3c   :  { %3039 = shalt.err (!%p3036_p12)
}
  0x3d   :  { %s3040_s28 = scalar_lea.vmem %s62_s21, 2048  ;;  %p3045_p0 = scmp.lt.s32.totalorder %s62_s21, %s62_s21 }
  0x3e   :  { %p3041_p13 = scmp.ne.s32.totalorder %s62_s21, %s3040_s28  ;;  %p3046_p1 = scmp.lt.s32.totalorder %s3040_s28, %s3040_s28 }
  0x40   :  { %p3047_p2 = por %p3046_p1, %p3045_p0 }
  0x42   :  { %p3048_p3 = pnand %p3047_p2, %p3041_p13 }
  0x44   :  { %3051 = shalt.err (!%p3048_p3)
}
  0x45   :  { %67 = dma.hbm_to_vmem [thread:$0]  %s3502_s4, 2048, %s62_s21, [#allocation13], %s3083_s11, %s3083_s11, %s3084_s12  }
  0x46   :  { %3074 = dma.done.wait [#allocation7], 4096  }
  0x47   :  { %3075 = vsyncadd [#allocation7], 4294963200 }
  0x48   :  { %3076 = dma.done.wait [#allocation10], 18432  }
  0x49   :  { %3077 = vsyncadd [#allocation10], 4294948864 }
  0x4a   :  { %3078 = dma.done.wait [#allocation13], 2048  }
  0x4b   :  { %3079 = vsyncadd [#allocation13], 4294965248  ;;  %v3092_v0 = vmov 0   ;;  %v2904_v1 = vld [vmem:[#allocation9 + $0x4] ss:$8 sps:$4 sm:$0xff]   ;;  %v2930_v19 = vld [vmem:[#allocation6 + $0x10] sm:$0xff]  }
  0x4c   :  { %469 = vmatprep.mubr.bf16.mxu0 %v3092_v0  ;;  %v2906_v2 = vld [vmem:[#allocation9] ss:$8 sps:$4 sm:$0xff]   ;;  %437 = vmatprep.subr.bf16.mxu0 %v2904_v1  ;;  %v2907_v3 = vld [vmem:[#allocation9 + $0x14] ss:$8 sps:$4 sm:$0xff]   ;;  %v2909_v4 = vld [vmem:[#allocation9 + $0x10] ss:$8 sps:$4 sm:$0xff]  }
  0x4d   :  { %438 = vmatpush1.bf16.msra.mxu0 %v2906_v2  ;;  %v2910_v5 = vld [vmem:[#allocation9 + $0x24] ss:$8 sps:$4 sm:$0xff]   ;;  %v2912_v6 = vld [vmem:[#allocation9 + $0x20] ss:$8 sps:$4 sm:$0xff]   ;;  %v2913_v7 = vld [vmem:[#allocation9 + $0x34] ss:$8 sps:$4 sm:$0xff]  }
  0x4e   :  { %439 = vmatprep.subr.bf16.mxu0 %v2907_v3  ;;  %v2915_v8 = vld [vmem:[#allocation9 + $0x30] ss:$8 sps:$4 sm:$0xff]   ;;  %v2916_v9 = vld [vmem:[#allocation9 + $0x44] ss:$8 sps:$4 sm:$0xff]   ;;  %v2918_v10 = vld [vmem:[#allocation9 + $0x40] ss:$8 sps:$4 sm:$0xff]  }
  0x4f   :  { %v2919_v11 = vld [vmem:[#allocation9 + $0x54] ss:$8 sps:$4 sm:$0xff]   ;;  %v2921_v12 = vld [vmem:[#allocation9 + $0x50] ss:$8 sps:$4 sm:$0xff]   ;;  %v2922_v13 = vld [vmem:[#allocation9 + $0x64] ss:$8 sps:$4 sm:$0xff]  }
  0x50   :  { %v2924_v14 = vld [vmem:[#allocation9 + $0x60] ss:$8 sps:$4 sm:$0xff]   ;;  %v2925_v15 = vld [vmem:[#allocation9 + $0x74] ss:$8 sps:$4 sm:$0xff]   ;;  %v2927_v16 = vld [vmem:[#allocation9 + $0x70] ss:$8 sps:$4 sm:$0xff]  }
  0x51   :  { %440 = vmatpush1.bf16.msra.mxu0 %v2909_v4  ;;  %v2928_v17 = vld [vmem:[#allocation6] sm:$0xff]   ;;  %v2929_v18 = vld [vmem:[#allocation6 + $0x8] sm:$0xff]   ;;  %v2931_v20 = vld [vmem:[#allocation6 + $0x18] sm:$0xff]   ;;  %vm3094_vm2 = vmmov 0   ;;  %s3096_s8 = smov [#allocation14]  }
  0x52   :  { %441 = vmatprep.subr.bf16.mxu0 %v2910_v5  ;;  %v2932_v21 = vld [vmem:[#allocation6 + $0x20] sm:$0xff]   ;;  %v2933_v22 = vld [vmem:[#allocation6 + $0x28] sm:$0xff]   ;;  %v2934_v23 = vld [vmem:[#allocation6 + $0x30] sm:$0xff]   ;;  %s2452_s9 = sshll.u32 %s3096_s8, 4  ;;  %s2453_s9 = int_to_ptr.vmem [resolvable:$true] %s2452_s9 }
  0x53   :  { %v2935_v24 = vld [vmem:[#allocation6 + $0x38] sm:$0xff]   ;;  %v2936_v25 = vld [vmem:[#allocation6 + $0x40] sm:$0xff]   ;;  %v2937_v26 = vld [vmem:[#allocation6 + $0x48] sm:$0xff]   ;;  %s3052_s10 = scalar_lea.vmem %s2453_s9, 64  ;;  %p3057_p5 = scmp.lt.s32.totalorder %s2453_s9, %s2453_s9 }
  0x54   :  { %v2938_v27 = vld [vmem:[#allocation6 + $0x50] sm:$0xff]   ;;  %v2939_v28 = vld [vmem:[#allocation6 + $0x58] sm:$0xff]   ;;  %v2940_v29 = vld [vmem:[#allocation6 + $0x60] sm:$0xff]   ;;  %p3053_p4 = scmp.ne.s32.totalorder %s2453_s9, %s3052_s10  ;;  %p3058_p6 = scmp.lt.s32.totalorder %s3052_s10, %s3052_s10 }
  0x55   :  { %442 = vmatpush1.bf16.msra.mxu0 %v2912_v6  ;;  %v2941_v30 = vld [vmem:[#allocation6 + $0x68] sm:$0xff]   ;;  %v2942_v31 = vld [vmem:[#allocation6 + $0x70] sm:$0xff]   ;;  %v2943_v32 = vld [vmem:[#allocation6 + $0x78] sm:$0xff]  }
  0x56   :  { %443 = vmatprep.subr.bf16.mxu0 %v2913_v7  ;;  %v2944_v33 = vld [vmem:[#allocation6 + $0x80] sm:$0xff]   ;;  %v2945_v34 = vld [vmem:[#allocation6 + $0x88] sm:$0xff]   ;;  %v2946_v35 = vld [vmem:[#allocation6 + $0x90] sm:$0xff]   ;;  %p3059_p7 = por %p3058_p6, %p3057_p5 }
  0x57   :  { %v2947_v36 = vld [vmem:[#allocation6 + $0x98] sm:$0xff]   ;;  %v2948_v37 = vld [vmem:[#allocation6 + $0xa0] sm:$0xff]   ;;  %v2949_v38 = vld [vmem:[#allocation6 + $0xa8] sm:$0xff]  }
  0x58   :  { %v2950_v39 = vld [vmem:[#allocation6 + $0xb0] sm:$0xff]   ;;  %v2951_v40 = vld [vmem:[#allocation6 + $0xb8] sm:$0xff]   ;;  %v2952_v41 = vld [vmem:[#allocation6 + $0xc0] sm:$0xff]   ;;  %p3060_p8 = pnand %p3059_p7, %p3053_p4 }
  0x59   :  { %444 = vmatpush1.bf16.msra.mxu0 %v2915_v8  ;;  %v2953_v42 = vld [vmem:[#allocation6 + $0xc8] sm:$0xff]   ;;  %v2954_v43 = vld [vmem:[#allocation6 + $0xd0] sm:$0xff]   ;;  %v2955_v47 = vld [vmem:[#allocation6 + $0xd8] sm:$0xff]  }
  0x5a   :  { %445 = vmatprep.subr.bf16.mxu0 %v2916_v9  ;;  %v919_v45 = vld [vmem:[#allocation11 + $0x8] sm:$0xff]  ;;  %v2956_v54 = vld [vmem:[#allocation6 + $0xe0] sm:$0xff]   ;;  %v2958_v5 = vld [vmem:[#allocation6 + $0xf0] sm:$0xff]  }
  0x5b   :  { %1250 = vmatprep.mubr.f32.mxu1 %v919_v45  ;;  %v2957_v61 = vld [vmem:[#allocation6 + $0xe8] sm:$0xff]  }
  0x5d   :  { %446 = vmatpush1.bf16.msra.mxu0 %v2918_v10 }
  0x5e   :  { %447 = vmatprep.subr.bf16.mxu0 %v2919_v11 }
  0x61   :  { %448 = vmatpush1.bf16.msra.mxu0 %v2921_v12  ;;  %v2959_v12 = vld [vmem:[#allocation6 + $0xf8] sm:$0xff]  }
  0x62   :  { %449 = vmatprep.subr.bf16.mxu0 %v2922_v13 }
  0x65   :  { %450 = vmatpush1.bf16.msra.mxu0 %v2924_v14 }
  0x66   :  { %451 = vmatprep.subr.bf16.mxu0 %v2925_v15 }
  0x69   :  { %452 = vmatpush1.bf16.msra.mxu0 %v2927_v16 }
  0x6c   :  { %470 = vmatmul.mubr.bf16.vlgmr.msra.gmra.mrb[0].mxu0 %v2928_v17 }
  0x6d   :  { %479 = vmatprep.mubr.bf16.mxu0 %v3092_v0 }
  0x74   :  { %480 = vmatmul.mubr.bf16.gmra.mrb[4].mxu0 %v2929_v18 }
  0x75   :  { %489 = vmatprep.mubr.bf16.mxu0 %v3092_v0 }
  0x7c   :  { %490 = vmatmul.mubr.bf16.gmra.mrb[8].mxu0 %v2930_v19 }
  0x7d   :  { %499 = vmatprep.mubr.bf16.mxu0 %v3092_v0 }
  0x84   :  { %500 = vmatmul.mubr.bf16.gmra.mrb[12].mxu0 %v2931_v20 }
  0x85   :  { %509 = vmatprep.mubr.bf16.mxu0 %v3092_v0 }
  0x8c   :  { %510 = vmatmul.mubr.bf16.gmra.mrb[16].mxu0 %v2932_v21 }
  0x8d   :  { %519 = vmatprep.mubr.bf16.mxu0 %v3092_v0 }
  0x94   :  { %520 = vmatmul.mubr.bf16.gmra.mrb[20].mxu0 %v2933_v22 }
  0x95   :  { %529 = vmatprep.mubr.bf16.mxu0 %v3092_v0 }
  0x9c   :  { %530 = vmatmul.mubr.bf16.gmra.mrb[24].mxu0 %v2934_v23 }
  0x9d   :  { %539 = vmatprep.mubr.bf16.mxu0 %v3092_v0 }
  0xa4   :  { %540 = vmatmul.mubr.bf16.gmra.mrb[28].mxu0 %v2935_v24 }
  0xa5   :  { %549 = vmatprep.mubr.bf16.mxu0 %v3092_v0 }
  0xac   :  { %550 = vmatmul.mubr.bf16.gmra.mrb[32].mxu0 %v2936_v25 }
  0xad   :  { %559 = vmatprep.mubr.bf16.mxu0 %v3092_v0 }
  0xb4   :  { %560 = vmatmul.mubr.bf16.gmra.mrb[36].mxu0 %v2937_v26 }
  0xb5   :  { %569 = vmatprep.mubr.bf16.mxu0 %v3092_v0 }
  0xbc   :  { %570 = vmatmul.mubr.bf16.gmra.mrb[40].mxu0 %v2938_v27 }
  0xbd   :  { %579 = vmatprep.mubr.bf16.mxu0 %v3092_v0 }
  0xc4   :  { %580 = vmatmul.mubr.bf16.gmra.mrb[44].mxu0 %v2939_v28 }
  0xc5   :  { %589 = vmatprep.mubr.bf16.mxu0 %v3092_v0 }
  0xcc   :  { %590 = vmatmul.mubr.bf16.gmra.mrb[48].mxu0 %v2940_v29 }
  0xcd   :  { %599 = vmatprep.mubr.bf16.mxu0 %v3092_v0 }
  0xd4   :  { %600 = vmatmul.mubr.bf16.gmra.mrb[52].mxu0 %v2941_v30 }
  0xd5   :  { %609 = vmatprep.mubr.bf16.mxu0 %v3092_v0 }
  0xdc   :  { %610 = vmatmul.mubr.bf16.gmra.mrb[56].mxu0 %v2942_v31 }
  0xdd   :  { %619 = vmatprep.mubr.bf16.mxu0 %v3092_v0 }
  0xe4   :  { %620 = vmatmul.mubr.bf16.gmra.mrb[60].mxu0 %v2943_v32 }
  0xe5   :  { %629 = vmatprep.mubr.bf16.mxu0 %v3092_v0 }
  0xec   :  { %630 = vmatmul.mubr.bf16.gmra.mrb[64].mxu0 %v2944_v33 }
  0xed   :  { %639 = vmatprep.mubr.bf16.mxu0 %v3092_v0 }
  0xf4   :  { %640 = vmatmul.mubr.bf16.gmra.mrb[68].mxu0 %v2945_v34 }
  0xf5   :  { %649 = vmatprep.mubr.bf16.mxu0 %v3092_v0 }
  0xfc   :  { %650 = vmatmul.mubr.bf16.gmra.mrb[72].mxu0 %v2946_v35 }
  0xfd   :  { %659 = vmatprep.mubr.bf16.mxu0 %v3092_v0 }
 0x104   :  { %660 = vmatmul.mubr.bf16.gmra.mrb[76].mxu0 %v2947_v36 }
 0x105   :  { %669 = vmatprep.mubr.bf16.mxu0 %v3092_v0 }
 0x10c   :  { %670 = vmatmul.mubr.bf16.gmra.mrb[80].mxu0 %v2948_v37 }
 0x10d   :  { %679 = vmatprep.mubr.bf16.mxu0 %v3092_v0 }
 0x114   :  { %680 = vmatmul.mubr.bf16.gmra.mrb[84].mxu0 %v2949_v38 }
 0x115   :  { %689 = vmatprep.mubr.bf16.mxu0 %v3092_v0 }
 0x11c   :  { %690 = vmatmul.mubr.bf16.gmra.mrb[88].mxu0 %v2950_v39 }
 0x11d   :  { %699 = vmatprep.mubr.bf16.mxu0 %v3092_v0 }
 0x124   :  { %700 = vmatmul.mubr.bf16.gmra.mrb[92].mxu0 %v2951_v40 }
 0x125   :  { %709 = vmatprep.mubr.bf16.mxu0 %v3092_v0 }
 0x12c   :  { %710 = vmatmul.mubr.bf16.gmra.mrb[96].mxu0 %v2952_v41 }
 0x12d   :  { %719 = vmatprep.mubr.bf16.mxu0 %v3092_v0 }
 0x134   :  { %720 = vmatmul.mubr.bf16.gmra.mrb[100].mxu0 %v2953_v42 }
 0x135   :  { %729 = vmatprep.mubr.bf16.mxu0 %v3092_v0 }
 0x13c   :  { %730 = vmatmul.mubr.bf16.gmra.mrb[104].mxu0 %v2954_v43 }
 0x13d   :  { %739 = vmatprep.mubr.bf16.mxu0 %v3092_v0 }
 0x13f   :  { %v471_v44 = vpop.f32.mrb[0].mxu0 }
 0x140   :  { %v473_v46 = vpop.f32.mrb[1].mxu0 }
 0x141   :  { %v475_v48 = vpop.f32.mrb[2].mxu0 }
 0x142   :  { %v2567_v49 = vpack.c.bf16 %v475_v48, %v471_v44  ;;  %v477_v50 = vpop.f32.mrb[3].mxu0 }
 0x143   :  { %v2565_v51 = vpack.c.bf16 %v477_v50, %v473_v46 }
 0x144   :  { %740 = vmatmul.mubr.bf16.gmra.mrb[108].mxu0 %v2955_v47 }
 0x145   :  { %2566 = vmatprep.subr.bf16.mxu1 %v2565_v51  ;;  %749 = vmatprep.mubr.bf16.mxu0 %v3092_v0 }
 0x146   :  { %2568 = vmatpush1.bf16.msra.mxu1 %v2567_v49 }
 0x147   :  { %v481_v52 = vpop.f32.mrb[4].mxu0 }
 0x148   :  { %v483_v53 = vpop.f32.mrb[5].mxu0 }
 0x149   :  { %v485_v55 = vpop.f32.mrb[6].mxu0 }
 0x14a   :  { %v2571_v56 = vpack.c.bf16 %v485_v55, %v481_v52  ;;  %v487_v57 = vpop.f32.mrb[7].mxu0 }
 0x14b   :  { %v2569_v58 = vpack.c.bf16 %v487_v57, %v483_v53 }
 0x14c   :  { %750 = vmatmul.mubr.bf16.gmra.mrb[112].mxu0 %v2956_v54 }
 0x14d   :  { %2570 = vmatprep.subr.bf16.mxu1 %v2569_v58  ;;  %759 = vmatprep.mubr.bf16.mxu0 %v3092_v0 }
 0x14e   :  { %2572 = vmatpush1.bf16.msra.mxu1 %v2571_v56 }
 0x14f   :  { %v491_v59 = vpop.f32.mrb[8].mxu0 }
 0x150   :  { %v493_v60 = vpop.f32.mrb[9].mxu0 }
 0x151   :  { %v495_v62 = vpop.f32.mrb[10].mxu0 }
 0x152   :  { %v2575_v63 = vpack.c.bf16 %v495_v62, %v491_v59  ;;  %v497_v1 = vpop.f32.mrb[11].mxu0 }
 0x153   :  { %v2573_v2 = vpack.c.bf16 %v497_v1, %v493_v60 }
 0x154   :  { %760 = vmatmul.mubr.bf16.gmra.mrb[116].mxu0 %v2957_v61 }
 0x155   :  { %2574 = vmatprep.subr.bf16.mxu1 %v2573_v2  ;;  %769 = vmatprep.mubr.bf16.mxu0 %v3092_v0 }
 0x156   :  { %2576 = vmatpush1.bf16.msra.mxu1 %v2575_v63 }
 0x157   :  { %v501_v3 = vpop.f32.mrb[12].mxu0 }
 0x158   :  { %v503_v4 = vpop.f32.mrb[13].mxu0 }
 0x159   :  { %v505_v6 = vpop.f32.mrb[14].mxu0 }
 0x15a   :  { %v2579_v7 = vpack.c.bf16 %v505_v6, %v501_v3  ;;  %v507_v8 = vpop.f32.mrb[15].mxu0 }
 0x15b   :  { %v2577_v9 = vpack.c.bf16 %v507_v8, %v503_v4 }
 0x15c   :  { %770 = vmatmul.mubr.bf16.gmra.mrb[120].mxu0 %v2958_v5 }
 0x15d   :  { %2578 = vmatprep.subr.bf16.mxu1 %v2577_v9  ;;  %779 = vmatprep.mubr.bf16.mxu0 %v3092_v0 }
 0x15e   :  { %2580 = vmatpush1.bf16.msra.mxu1 %v2579_v7 }
 0x15f   :  { %v511_v10 = vpop.f32.mrb[16].mxu0 }
 0x160   :  { %v513_v11 = vpop.f32.mrb[17].mxu0 }
 0x161   :  { %v515_v13 = vpop.f32.mrb[18].mxu0 }
 0x162   :  { %v2583_v14 = vpack.c.bf16 %v515_v13, %v511_v10  ;;  %v517_v15 = vpop.f32.mrb[19].mxu0 }
 0x163   :  { %v2581_v16 = vpack.c.bf16 %v517_v15, %v513_v11 }
 0x164   :  { %780 = vmatmul.mubr.bf16.gmra.mrb[124].mxu0 %v2959_v12 }
 0x165   :  { %2582 = vmatprep.subr.bf16.mxu1 %v2581_v16 }
 0x166   :  { %2584 = vmatpush1.bf16.msra.mxu1 %v2583_v14 }
 0x167   :  { %v521_v17 = vpop.f32.mrb[20].mxu0 }
 0x168   :  { %v523_v18 = vpop.f32.mrb[21].mxu0 }
 0x169   :  { %v525_v19 = vpop.f32.mrb[22].mxu0 }
 0x16a   :  { %v2587_v20 = vpack.c.bf16 %v525_v19, %v521_v17  ;;  %v527_v21 = vpop.f32.mrb[23].mxu0  ;;  %v918_v19 = vld [vmem:[#allocation11] sm:$0xff] }
 0x16b   :  { %v2585_v22 = vpack.c.bf16 %v527_v21, %v523_v18  ;;  %v923_v21 = vld [vmem:[#allocation11 + $0x28] sm:$0xff] }
 0x16d   :  { %2586 = vmatprep.subr.bf16.mxu1 %v2585_v22 }
 0x16e   :  { %2588 = vmatpush1.bf16.msra.mxu1 %v2587_v20 }
 0x16f   :  { %v531_v0 = vpop.f32.mrb[24].mxu0 }
 0x170   :  { %v533_v23 = vpop.f32.mrb[25].mxu0 }
 0x171   :  { %v535_v24 = vpop.f32.mrb[26].mxu0 }
 0x172   :  { %v2591_v25 = vpack.c.bf16 %v535_v24, %v531_v0  ;;  %v537_v26 = vpop.f32.mrb[27].mxu0 }
 0x173   :  { %v2589_v27 = vpack.c.bf16 %v537_v26, %v533_v23 }
 0x175   :  { %2590 = vmatprep.subr.bf16.mxu1 %v2589_v27  ;;  %v927_v27 = vld [vmem:[#allocation11 + $0x48] sm:$0xff] }
 0x176   :  { %2592 = vmatpush1.bf16.msra.mxu1 %v2591_v25  ;;  %v922_v25 = vld [vmem:[#allocation11 + $0x20] sm:$0xff] }
 0x177   :  { %v541_v28 = vpop.f32.mrb[28].mxu0 }
 0x178   :  { %v543_v29 = vpop.f32.mrb[29].mxu0 }
 0x179   :  { %v545_v30 = vpop.f32.mrb[30].mxu0 }
 0x17a   :  { %v2595_v31 = vpack.c.bf16 %v545_v30, %v541_v28  ;;  %v547_v32 = vpop.f32.mrb[31].mxu0  ;;  %v926_v28 = vld [vmem:[#allocation11 + $0x40] sm:$0xff]  ;;  %v931_v30 = vld [vmem:[#allocation11 + $0x68] sm:$0xff] }
 0x17b   :  { %v2593_v33 = vpack.c.bf16 %v547_v32, %v543_v29 }
 0x17d   :  { %2594 = vmatprep.subr.bf16.mxu1 %v2593_v33 }
 0x17e   :  { %2596 = vmatpush1.bf16.msra.mxu1 %v2595_v31 }
 0x17f   :  { %v551_v34 = vpop.f32.mrb[32].mxu0 }
 0x180   :  { %v553_v35 = vpop.f32.mrb[33].mxu0 }
 0x181   :  { %v555_v36 = vpop.f32.mrb[34].mxu0 }
 0x182   :  { %v2599_v37 = vpack.c.bf16 %v555_v36, %v551_v34  ;;  %v557_v38 = vpop.f32.mrb[35].mxu0 }
 0x183   :  { %v2597_v39 = vpack.c.bf16 %v557_v38, %v553_v35  ;;  %v930_v35 = vld [vmem:[#allocation11 + $0x60] sm:$0xff] }
 0x184   :  { %v934_v38 = vld [vmem:[#allocation11 + $0x80] sm:$0xff] }
 0x185   :  { %2598 = vmatprep.subr.bf16.mxu1 %v2597_v39 }
 0x186   :  { %2600 = vmatpush1.bf16.msra.mxu1 %v2599_v37  ;;  %v935_v37 = vld [vmem:[#allocation11 + $0x88] sm:$0xff] }
 0x187   :  { %v561_v40 = vpop.f32.mrb[36].mxu0 }
 0x188   :  { %v563_v41 = vpop.f32.mrb[37].mxu0 }
 0x189   :  { %v565_v42 = vpop.f32.mrb[38].mxu0 }
 0x18a   :  { %v2603_v43 = vpack.c.bf16 %v565_v42, %v561_v40  ;;  %v567_v44 = vpop.f32.mrb[39].mxu0  ;;  %v939_v40 = vld [vmem:[#allocation11 + $0xa8] sm:$0xff] }
 0x18b   :  { %v2601_v45 = vpack.c.bf16 %v567_v44, %v563_v41 }
 0x18d   :  { %2602 = vmatprep.subr.bf16.mxu1 %v2601_v45  ;;  %v938_v45 = vld [vmem:[#allocation11 + $0xa0] sm:$0xff] }
 0x18e   :  { %2604 = vmatpush1.bf16.msra.mxu1 %v2603_v43 }
 0x18f   :  { %v571_v46 = vpop.f32.mrb[40].mxu0 }
 0x190   :  { %v573_v47 = vpop.f32.mrb[41].mxu0 }
 0x191   :  { %v575_v48 = vpop.f32.mrb[42].mxu0 }
 0x192   :  { %v2607_v49 = vpack.c.bf16 %v575_v48, %v571_v46  ;;  %v577_v50 = vpop.f32.mrb[43].mxu0  ;;  %v942_v48 = vld [vmem:[#allocation11 + $0xc0] sm:$0xff] }
 0x193   :  { %v2605_v51 = vpack.c.bf16 %v577_v50, %v573_v47  ;;  %v943_v47 = vld [vmem:[#allocation11 + $0xc8] sm:$0xff] }
 0x194   :  { %v947_v50 = vld [vmem:[#allocation11 + $0xe8] sm:$0xff] }
 0x195   :  { %2606 = vmatprep.subr.bf16.mxu1 %v2605_v51 }
 0x196   :  { %2608 = vmatpush1.bf16.msra.mxu1 %v2607_v49 }
 0x197   :  { %v581_v52 = vpop.f32.mrb[44].mxu0 }
 0x198   :  { %v583_v53 = vpop.f32.mrb[45].mxu0 }
 0x199   :  { %v585_v54 = vpop.f32.mrb[46].mxu0 }
 0x19a   :  { %v2611_v55 = vpack.c.bf16 %v585_v54, %v581_v52  ;;  %v587_v56 = vpop.f32.mrb[47].mxu0 }
 0x19b   :  { %v2609_v57 = vpack.c.bf16 %v587_v56, %v583_v53 }
 0x19d   :  { %2610 = vmatprep.subr.bf16.mxu1 %v2609_v57  ;;  %v951_v57 = vld [vmem:[#allocation11 + $0x108] sm:$0xff] }
 0x19e   :  { %2612 = vmatpush1.bf16.msra.mxu1 %v2611_v55  ;;  %v946_v55 = vld [vmem:[#allocation11 + $0xe0] sm:$0xff] }
 0x19f   :  { %v591_v58 = vpop.f32.mrb[48].mxu0 }
 0x1a0   :  { %v593_v59 = vpop.f32.mrb[49].mxu0 }
 0x1a1   :  { %v595_v60 = vpop.f32.mrb[50].mxu0 }
 0x1a2   :  { %v2615_v61 = vpack.c.bf16 %v595_v60, %v591_v58  ;;  %v597_v62 = vpop.f32.mrb[51].mxu0  ;;  %v950_v58 = vld [vmem:[#allocation11 + $0x100] sm:$0xff]  ;;  %v955_v60 = vld [vmem:[#allocation11 + $0x128] sm:$0xff] }
 0x1a3   :  { %v2613_v63 = vpack.c.bf16 %v597_v62, %v593_v59 }
 0x1a5   :  { %2614 = vmatprep.subr.bf16.mxu1 %v2613_v63 }
 0x1a6   :  { %2616 = vmatpush1.bf16.msra.mxu1 %v2615_v61 }
 0x1a7   :  { %v601_v1 = vpop.f32.mrb[52].mxu0 }
 0x1a8   :  { %v603_v2 = vpop.f32.mrb[53].mxu0 }
 0x1a9   :  { %v605_v3 = vpop.f32.mrb[54].mxu0 }
 0x1aa   :  { %v2619_v4 = vpack.c.bf16 %v605_v3, %v601_v1  ;;  %v607_v5 = vpop.f32.mrb[55].mxu0 }
 0x1ab   :  { %v2617_v6 = vpack.c.bf16 %v607_v5, %v603_v2  ;;  %v954_v2 = vld [vmem:[#allocation11 + $0x120] sm:$0xff] }
 0x1ac   :  { %v958_v5 = vld [vmem:[#allocation11 + $0x140] sm:$0xff] }
 0x1ad   :  { %2618 = vmatprep.subr.bf16.mxu1 %v2617_v6 }
 0x1ae   :  { %2620 = vmatpush1.bf16.msra.mxu1 %v2619_v4  ;;  %v959_v4 = vld [vmem:[#allocation11 + $0x148] sm:$0xff] }
 0x1af   :  { %v611_v7 = vpop.f32.mrb[56].mxu0 }
 0x1b0   :  { %v613_v8 = vpop.f32.mrb[57].mxu0 }
 0x1b1   :  { %v615_v9 = vpop.f32.mrb[58].mxu0 }
 0x1b2   :  { %v2623_v10 = vpack.c.bf16 %v615_v9, %v611_v7  ;;  %v617_v11 = vpop.f32.mrb[59].mxu0  ;;  %v963_v7 = vld [vmem:[#allocation11 + $0x168] sm:$0xff] }
 0x1b3   :  { %v2621_v12 = vpack.c.bf16 %v617_v11, %v613_v8 }
 0x1b5   :  { %2622 = vmatprep.subr.bf16.mxu1 %v2621_v12  ;;  %v962_v12 = vld [vmem:[#allocation11 + $0x160] sm:$0xff] }
 0x1b6   :  { %2624 = vmatpush1.bf16.msra.mxu1 %v2623_v10 }
 0x1b7   :  { %v621_v13 = vpop.f32.mrb[60].mxu0 }
 0x1b8   :  { %v623_v14 = vpop.f32.mrb[61].mxu0 }
 0x1b9   :  { %v625_v15 = vpop.f32.mrb[62].mxu0 }
 0x1ba   :  { %v2627_v16 = vpack.c.bf16 %v625_v15, %v621_v13  ;;  %v627_v17 = vpop.f32.mrb[63].mxu0  ;;  %v966_v15 = vld [vmem:[#allocation11 + $0x180] sm:$0xff] }
 0x1bb   :  { %v2625_v18 = vpack.c.bf16 %v627_v17, %v623_v14  ;;  %v967_v14 = vld [vmem:[#allocation11 + $0x188] sm:$0xff] }
 0x1bc   :  { %v971_v17 = vld [vmem:[#allocation11 + $0x1a8] sm:$0xff] }
 0x1bd   :  { %2626 = vmatprep.subr.bf16.mxu1 %v2625_v18 }
 0x1be   :  { %2628 = vmatpush1.bf16.msra.mxu1 %v2627_v16 }
 0x1bf   :  { %v631_v20 = vpop.f32.mrb[64].mxu0 }
 0x1c0   :  { %v633_v22 = vpop.f32.mrb[65].mxu0 }
 0x1c1   :  { %v635_v0 = vpop.f32.mrb[66].mxu0  ;;  %1251 = vmatmul.mubr.f32.vlgmr.msra.gmra.mrb[0].mxu1 %v918_v19 }
 0x1c2   :  { %v2631_v23 = vpack.c.bf16 %v635_v0, %v631_v20  ;;  %v637_v24 = vpop.f32.mrb[67].mxu0  ;;  %1256 = vmatprep.mubr.f32.mxu1 %v923_v21 }
 0x1c3   :  { %v2629_v26 = vpack.c.bf16 %v637_v24, %v633_v22  ;;  %v970_v22 = vld [vmem:[#allocation11 + $0x1a0] sm:$0xff] }
 0x1c4   :  { %v974_v24 = vld [vmem:[#allocation11 + $0x1c0] sm:$0xff] }
 0x1c5   :  { %1257 = vmatmul.mubr.f32.gmra.mrb[2].mxu1 %v922_v25  ;;  %2630 = vmatprep.subr.bf16.mxu1 %v2629_v26  ;;  %v979_v26 = vld [vmem:[#allocation11 + $0x1e8] sm:$0xff] }
 0x1c6   :  { %2632 = vmatpush1.bf16.msra.mxu1 %v2631_v23  ;;  %1262 = vmatprep.mubr.f32.mxu1 %v927_v27  ;;  %v975_v23 = vld [vmem:[#allocation11 + $0x1c8] sm:$0xff] }
 0x1c7   :  { %v641_v29 = vpop.f32.mrb[68].mxu0 }
 0x1c8   :  { %v643_v31 = vpop.f32.mrb[69].mxu0 }
 0x1c9   :  { %v645_v32 = vpop.f32.mrb[70].mxu0  ;;  %1263 = vmatmul.mubr.f32.gmra.mrb[4].mxu1 %v926_v28 }
 0x1ca   :  { %v2635_v33 = vpack.c.bf16 %v645_v32, %v641_v29  ;;  %v647_v34 = vpop.f32.mrb[71].mxu0  ;;  %1268 = vmatprep.mubr.f32.mxu1 %v931_v30 }
 0x1cb   :  { %v2633_v36 = vpack.c.bf16 %v647_v34, %v643_v31  ;;  %v978_v31 = vld [vmem:[#allocation11 + $0x1e0] sm:$0xff] }
 0x1cc   :  { %v982_v34 = vld [vmem:[#allocation11 + $0x200] sm:$0xff] }
 0x1cd   :  { %1269 = vmatmul.mubr.f32.gmra.mrb[6].mxu1 %v930_v35  ;;  %2634 = vmatprep.subr.bf16.mxu1 %v2633_v36  ;;  %v987_v36 = vld [vmem:[#allocation11 + $0x228] sm:$0xff] }
 0x1ce   :  { %2636 = vmatpush1.bf16.msra.mxu1 %v2635_v33  ;;  %1274 = vmatprep.mubr.f32.mxu1 %v935_v37  ;;  %v983_v33 = vld [vmem:[#allocation11 + $0x208] sm:$0xff] }
 0x1cf   :  { %v651_v39 = vpop.f32.mrb[72].mxu0 }
 0x1d0   :  { %v653_v41 = vpop.f32.mrb[73].mxu0 }
 0x1d1   :  { %v655_v42 = vpop.f32.mrb[74].mxu0  ;;  %1275 = vmatmul.mubr.f32.gmra.mrb[8].mxu1 %v934_v38 }
 0x1d2   :  { %v2639_v43 = vpack.c.bf16 %v655_v42, %v651_v39  ;;  %v657_v44 = vpop.f32.mrb[75].mxu0  ;;  %1280 = vmatprep.mubr.f32.mxu1 %v939_v40 }
 0x1d3   :  { %v2637_v46 = vpack.c.bf16 %v657_v44, %v653_v41  ;;  %v986_v41 = vld [vmem:[#allocation11 + $0x220] sm:$0xff] }
 0x1d4   :  { %v990_v44 = vld [vmem:[#allocation11 + $0x240] sm:$0xff] }
 0x1d5   :  { %1281 = vmatmul.mubr.f32.gmra.mrb[10].mxu1 %v938_v45  ;;  %2638 = vmatprep.subr.bf16.mxu1 %v2637_v46  ;;  %v995_v46 = vld [vmem:[#allocation11 + $0x268] sm:$0xff] }
 0x1d6   :  { %2640 = vmatpush1.bf16.msra.mxu1 %v2639_v43  ;;  %1286 = vmatprep.mubr.f32.mxu1 %v943_v47  ;;  %v991_v43 = vld [vmem:[#allocation11 + $0x248] sm:$0xff] }
 0x1d7   :  { %v661_v49 = vpop.f32.mrb[76].mxu0 }
 0x1d8   :  { %v663_v51 = vpop.f32.mrb[77].mxu0 }
 0x1d9   :  { %v665_v52 = vpop.f32.mrb[78].mxu0  ;;  %1287 = vmatmul.mubr.f32.gmra.mrb[12].mxu1 %v942_v48 }
 0x1da   :  { %v2643_v53 = vpack.c.bf16 %v665_v52, %v661_v49  ;;  %v667_v54 = vpop.f32.mrb[79].mxu0  ;;  %1292 = vmatprep.mubr.f32.mxu1 %v947_v50 }
 0x1db   :  { %v2641_v56 = vpack.c.bf16 %v667_v54, %v663_v51  ;;  %v994_v51 = vld [vmem:[#allocation11 + $0x260] sm:$0xff] }
 0x1dc   :  { %v998_v54 = vld [vmem:[#allocation11 + $0x280] sm:$0xff] }
 0x1dd   :  { %1293 = vmatmul.mubr.f32.gmra.mrb[14].mxu1 %v946_v55  ;;  %2642 = vmatprep.subr.bf16.mxu1 %v2641_v56  ;;  %v1003_v56 = vld [vmem:[#allocation11 + $0x2a8] sm:$0xff] }
 0x1de   :  { %2644 = vmatpush1.bf16.msra.mxu1 %v2643_v53  ;;  %1298 = vmatprep.mubr.f32.mxu1 %v951_v57  ;;  %v999_v53 = vld [vmem:[#allocation11 + $0x288] sm:$0xff] }
 0x1df   :  { %v671_v59 = vpop.f32.mrb[80].mxu0 }
 0x1e0   :  { %v673_v61 = vpop.f32.mrb[81].mxu0 }
 0x1e1   :  { %v675_v62 = vpop.f32.mrb[82].mxu0  ;;  %1299 = vmatmul.mubr.f32.gmra.mrb[16].mxu1 %v950_v58 }
 0x1e2   :  { %v2647_v63 = vpack.c.bf16 %v675_v62, %v671_v59  ;;  %v677_v1 = vpop.f32.mrb[83].mxu0  ;;  %1304 = vmatprep.mubr.f32.mxu1 %v955_v60 }
 0x1e3   :  { %v2645_v3 = vpack.c.bf16 %v677_v1, %v673_v61  ;;  %v1002_v61 = vld [vmem:[#allocation11 + $0x2a0] sm:$0xff] }
 0x1e4   :  { %v1006_v1 = vld [vmem:[#allocation11 + $0x2c0] sm:$0xff] }
 0x1e5   :  { %1305 = vmatmul.mubr.f32.gmra.mrb[18].mxu1 %v954_v2  ;;  %2646 = vmatprep.subr.bf16.mxu1 %v2645_v3  ;;  %v1011_v3 = vld [vmem:[#allocation11 + $0x2e8] sm:$0xff] }
 0x1e6   :  { %2648 = vmatpush1.bf16.msra.mxu1 %v2647_v63  ;;  %1310 = vmatprep.mubr.f32.mxu1 %v959_v4  ;;  %v1007_v63 = vld [vmem:[#allocation11 + $0x2c8] sm:$0xff] }
 0x1e7   :  { %v681_v6 = vpop.f32.mrb[84].mxu0 }
 0x1e8   :  { %v683_v8 = vpop.f32.mrb[85].mxu0 }
 0x1e9   :  { %v685_v9 = vpop.f32.mrb[86].mxu0  ;;  %1311 = vmatmul.mubr.f32.gmra.mrb[20].mxu1 %v958_v5 }
 0x1ea   :  { %v2651_v10 = vpack.c.bf16 %v685_v9, %v681_v6  ;;  %v687_v11 = vpop.f32.mrb[87].mxu0  ;;  %1316 = vmatprep.mubr.f32.mxu1 %v963_v7 }
 0x1eb   :  { %v2649_v13 = vpack.c.bf16 %v687_v11, %v683_v8  ;;  %v1010_v8 = vld [vmem:[#allocation11 + $0x2e0] sm:$0xff] }
 0x1ec   :  { %v1014_v11 = vld [vmem:[#allocation11 + $0x300] sm:$0xff] }
 0x1ed   :  { %1317 = vmatmul.mubr.f32.gmra.mrb[22].mxu1 %v962_v12  ;;  %2650 = vmatprep.subr.bf16.mxu1 %v2649_v13  ;;  %v1019_v13 = vld [vmem:[#allocation11 + $0x328] sm:$0xff] }
 0x1ee   :  { %2652 = vmatpush1.bf16.msra.mxu1 %v2651_v10  ;;  %1322 = vmatprep.mubr.f32.mxu1 %v967_v14  ;;  %v1015_v10 = vld [vmem:[#allocation11 + $0x308] sm:$0xff] }
 0x1ef   :  { %v691_v16 = vpop.f32.mrb[88].mxu0 }
 0x1f0   :  { %v693_v18 = vpop.f32.mrb[89].mxu0 }
 0x1f1   :  { %v695_v19 = vpop.f32.mrb[90].mxu0  ;;  %1323 = vmatmul.mubr.f32.gmra.mrb[24].mxu1 %v966_v15 }
 0x1f2   :  { %v2655_v20 = vpack.c.bf16 %v695_v19, %v691_v16  ;;  %v697_v21 = vpop.f32.mrb[91].mxu0  ;;  %1328 = vmatprep.mubr.f32.mxu1 %v971_v17  ;;  %v2195_v16 = vld [vmem:[#allocation12] sm:$0xff]  ;;  %v2196_v17 = vld [vmem:[#allocation12 + $0x8] sm:$0xff] }
 0x1f3   :  { %v2653_v0 = vpack.c.bf16 %v697_v21, %v693_v18  ;;  %v2197_v18 = vld [vmem:[#allocation12 + $0x10] sm:$0xff]  ;;  %v1018_v21 = vld [vmem:[#allocation11 + $0x320] sm:$0xff] }
 0x1f5   :  { %1329 = vmatmul.mubr.f32.gmra.mrb[26].mxu1 %v970_v22  ;;  %2654 = vmatprep.subr.bf16.mxu1 %v2653_v0  ;;  %v3093_v22 = vmov 0.0|0.0   ;;  %v2694_v0 = vpack.c.bf16 %v2196_v17, %v2195_v16  ;;  %v961_v16 = vld [vmem:[#allocation11 + $0x158] sm:$0xff]  ;;  %v960_v17 = vld [vmem:[#allocation11 + $0x150] sm:$0xff] }
 0x1f6   :  { %2656 = vmatpush1.bf16.msra.mxu1 %v2655_v20  ;;  %1334 = vmatprep.mubr.f32.mxu1 %v975_v23  ;;  %v2198_v23 = vld [vmem:[#allocation12 + $0x18] sm:$0xff] }
 0x1f7   :  { %v701_v25 = vpop.f32.mrb[92].mxu0  ;;  %2693 = vmatprep.subr.bf16.mxu0 %v3093_v22 }
 0x1f8   :  { %v703_v27 = vpop.f32.mrb[93].mxu0  ;;  %2695 = vmatpush3.bf16.msra.mxu0 %v2694_v0  ;;  %v973_v0 = vld [vmem:[#allocation11 + $0x1b8] sm:$0xff] }
 0x1f9   :  { %v705_v28 = vpop.f32.mrb[94].mxu0  ;;  %1335 = vmatmul.mubr.f32.gmra.mrb[28].mxu1 %v974_v24  ;;  %2696 = vmatprep.subr.bf16.mxu0 %v3093_v22 }
 0x1fa   :  { %v2659_v29 = vpack.c.bf16 %v705_v28, %v701_v25  ;;  %v707_v30 = vpop.f32.mrb[95].mxu0  ;;  %1340 = vmatprep.mubr.f32.mxu1 %v979_v26  ;;  %v1023_v25 = vld [vmem:[#allocation11 + $0x348] sm:$0xff]  ;;  %v2697_v26 = vpack.c.bf16 %v2198_v23, %v2197_v18  ;;  %v965_v18 = vld [vmem:[#allocation11 + $0x178] sm:$0xff]  ;;  %v972_v23 = vld [vmem:[#allocation11 + $0x1b0] sm:$0xff] }
 0x1fb   :  { %v2657_v32 = vpack.c.bf16 %v707_v30, %v703_v27  ;;  %v2199_v27 = vld [vmem:[#allocation12 + $0x20] sm:$0xff]  ;;  %v2200_v28 = vld [vmem:[#allocation12 + $0x28] sm:$0xff] }
 0x1fc   :  { %2698 = vmatpush3.bf16.msra.mxu0 %v2697_v26  ;;  %v981_v26 = vld [vmem:[#allocation11 + $0x1f8] sm:$0xff] }
 0x1fd   :  { %1341 = vmatmul.mubr.f32.gmra.mrb[30].mxu1 %v978_v31  ;;  %2658 = vmatprep.subr.bf16.mxu1 %v2657_v32  ;;  %v1027_v31 = vld [vmem:[#allocation11 + $0x368] sm:$0xff] }
 0x1fe   :  { %2660 = vmatpush1.bf16.msra.mxu1 %v2659_v29  ;;  %1346 = vmatprep.mubr.f32.mxu1 %v983_v33  ;;  %v1022_v29 = vld [vmem:[#allocation11 + $0x340] sm:$0xff]  ;;  %v2700_v33 = vpack.c.bf16 %v2200_v28, %v2199_v27  ;;  %v980_v27 = vld [vmem:[#allocation11 + $0x1f0] sm:$0xff]  ;;  %v985_v28 = vld [vmem:[#allocation11 + $0x218] sm:$0xff] }
 0x1ff   :  { %v711_v35 = vpop.f32.mrb[96].mxu0  ;;  %2699 = vmatprep.subr.bf16.mxu0 %v3093_v22 }
 0x200   :  { %v713_v37 = vpop.f32.mrb[97].mxu0  ;;  %2701 = vmatpush3.bf16.msra.mxu0 %v2700_v33  ;;  %v2201_v33 = vld [vmem:[#allocation12 + $0x30] sm:$0xff] }
 0x201   :  { %v715_v38 = vpop.f32.mrb[98].mxu0  ;;  %1347 = vmatmul.mubr.f32.gmra.mrb[32].mxu1 %v982_v34  ;;  %2702 = vmatprep.subr.bf16.mxu0 %v3093_v22 }
 0x202   :  { %v2663_v39 = vpack.c.bf16 %v715_v38, %v711_v35  ;;  %v717_v40 = vpop.f32.mrb[99].mxu0  ;;  %1352 = vmatprep.mubr.f32.mxu1 %v987_v36 }
 0x203   :  { %v2661_v42 = vpack.c.bf16 %v717_v40, %v713_v37  ;;  %v1026_v37 = vld [vmem:[#allocation11 + $0x360] sm:$0xff] }
 0x204   :  { %v1030_v40 = vld [vmem:[#allocation11 + $0x380] sm:$0xff] }
 0x205   :  { %1353 = vmatmul.mubr.f32.gmra.mrb[34].mxu1 %v986_v41  ;;  %2662 = vmatprep.subr.bf16.mxu1 %v2661_v42  ;;  %v1035_v42 = vld [vmem:[#allocation11 + $0x3a8] sm:$0xff] }
 0x206   :  { %2664 = vmatpush1.bf16.msra.mxu1 %v2663_v39  ;;  %1358 = vmatprep.mubr.f32.mxu1 %v991_v43  ;;  %v1031_v39 = vld [vmem:[#allocation11 + $0x388] sm:$0xff] }
 0x207   :  { %v721_v45 = vpop.f32.mrb[100].mxu0 }
 0x208   :  { %v723_v47 = vpop.f32.mrb[101].mxu0 }
 0x209   :  { %v725_v48 = vpop.f32.mrb[102].mxu0  ;;  %1359 = vmatmul.mubr.f32.gmra.mrb[36].mxu1 %v990_v44 }
 0x20a   :  { %v2667_v49 = vpack.c.bf16 %v725_v48, %v721_v45  ;;  %v727_v50 = vpop.f32.mrb[103].mxu0  ;;  %1364 = vmatprep.mubr.f32.mxu1 %v995_v46 }
 0x20b   :  { %v2665_v52 = vpack.c.bf16 %v727_v50, %v723_v47  ;;  %v1034_v47 = vld [vmem:[#allocation11 + $0x3a0] sm:$0xff] }
 0x20c   :  { %v1038_v50 = vld [vmem:[#allocation11 + $0x3c0] sm:$0xff] }
 0x20d   :  { %1365 = vmatmul.mubr.f32.gmra.mrb[38].mxu1 %v994_v51  ;;  %2666 = vmatprep.subr.bf16.mxu1 %v2665_v52  ;;  %v1043_v52 = vld [vmem:[#allocation11 + $0x3e8] sm:$0xff] }
 0x20e   :  { %2668 = vmatpush1.bf16.msra.mxu1 %v2667_v49  ;;  %1370 = vmatprep.mubr.f32.mxu1 %v999_v53  ;;  %v1039_v49 = vld [vmem:[#allocation11 + $0x3c8] sm:$0xff] }
 0x20f   :  { %v731_v55 = vpop.f32.mrb[104].mxu0 }
 0x210   :  { %v733_v57 = vpop.f32.mrb[105].mxu0 }
 0x211   :  { %v735_v58 = vpop.f32.mrb[106].mxu0  ;;  %1371 = vmatmul.mubr.f32.gmra.mrb[40].mxu1 %v998_v54 }
 0x212   :  { %v2671_v59 = vpack.c.bf16 %v735_v58, %v731_v55  ;;  %v737_v60 = vpop.f32.mrb[107].mxu0  ;;  %1376 = vmatprep.mubr.f32.mxu1 %v1003_v56 }
 0x213   :  { %v2669_v62 = vpack.c.bf16 %v737_v60, %v733_v57  ;;  %v1042_v57 = vld [vmem:[#allocation11 + $0x3e0] sm:$0xff]  ;;  %v920_v60 = vld [vmem:[#allocation11 + $0x10] sm:$0xff] }
 0x215   :  { %1377 = vmatmul.mubr.f32.gmra.mrb[42].mxu1 %v1002_v61  ;;  %2670 = vmatprep.subr.bf16.mxu1 %v2669_v62  ;;  %v925_v61 = vld [vmem:[#allocation11 + $0x38] sm:$0xff]  ;;  %v924_v62 = vld [vmem:[#allocation11 + $0x30] sm:$0xff] }
 0x216   :  { %2672 = vmatpush1.bf16.msra.mxu1 %v2671_v59  ;;  %1382 = vmatprep.mubr.f32.mxu1 %v1007_v63  ;;  %v921_v59 = vld [vmem:[#allocation11 + $0x18] sm:$0xff] }
 0x217   :  { %v741_v2 = vpop.f32.mrb[108].mxu0  ;;  %v929_v63 = vld [vmem:[#allocation11 + $0x58] sm:$0xff] }
 0x218   :  { %v743_v4 = vpop.f32.mrb[109].mxu0 }
 0x219   :  { %v745_v5 = vpop.f32.mrb[110].mxu0  ;;  %1383 = vmatmul.mubr.f32.gmra.mrb[44].mxu1 %v1006_v1  ;;  %v928_v1 = vld [vmem:[#allocation11 + $0x50] sm:$0xff] }
 0x21a   :  { %v2675_v6 = vpack.c.bf16 %v745_v5, %v741_v2  ;;  %v747_v7 = vpop.f32.mrb[111].mxu0  ;;  %1388 = vmatprep.mubr.f32.mxu1 %v1011_v3  ;;  %v933_v2 = vld [vmem:[#allocation11 + $0x78] sm:$0xff]  ;;  %v932_v3 = vld [vmem:[#allocation11 + $0x70] sm:$0xff] }
 0x21b   :  { %v2673_v9 = vpack.c.bf16 %v747_v7, %v743_v4  ;;  %v937_v4 = vld [vmem:[#allocation11 + $0x98] sm:$0xff]  ;;  %v936_v5 = vld [vmem:[#allocation11 + $0x90] sm:$0xff] }
 0x21c   :  { %v940_v7 = vld [vmem:[#allocation11 + $0xb0] sm:$0xff] }
 0x21d   :  { %1389 = vmatmul.mubr.f32.gmra.mrb[46].mxu1 %v1010_v8  ;;  %2674 = vmatprep.subr.bf16.mxu1 %v2673_v9  ;;  %v945_v8 = vld [vmem:[#allocation11 + $0xd8] sm:$0xff]  ;;  %v944_v9 = vld [vmem:[#allocation11 + $0xd0] sm:$0xff] }
 0x21e   :  { %2676 = vmatpush1.bf16.msra.mxu1 %v2675_v6  ;;  %1394 = vmatprep.mubr.f32.mxu1 %v1015_v10  ;;  %v941_v6 = vld [vmem:[#allocation11 + $0xb8] sm:$0xff] }
 0x21f   :  { %v751_v12 = vpop.f32.mrb[112].mxu0  ;;  %v949_v10 = vld [vmem:[#allocation11 + $0xf8] sm:$0xff] }
 0x220   :  { %v753_v14 = vpop.f32.mrb[113].mxu0 }
 0x221   :  { %v755_v15 = vpop.f32.mrb[114].mxu0  ;;  %1395 = vmatmul.mubr.f32.gmra.mrb[48].mxu1 %v1014_v11  ;;  %v948_v11 = vld [vmem:[#allocation11 + $0xf0] sm:$0xff] }
 0x222   :  { %v2679_v19 = vpack.c.bf16 %v755_v15, %v751_v12  ;;  %v757_v20 = vpop.f32.mrb[115].mxu0  ;;  %1400 = vmatprep.mubr.f32.mxu1 %v1019_v13  ;;  %v953_v12 = vld [vmem:[#allocation11 + $0x118] sm:$0xff]  ;;  %v952_v13 = vld [vmem:[#allocation11 + $0x110] sm:$0xff] }
 0x223   :  { %v2677_v24 = vpack.c.bf16 %v757_v20, %v753_v14  ;;  %v957_v14 = vld [vmem:[#allocation11 + $0x138] sm:$0xff]  ;;  %v956_v15 = vld [vmem:[#allocation11 + $0x130] sm:$0xff] }
 0x224   :  { %v969_v20 = vld [vmem:[#allocation11 + $0x198] sm:$0xff] }
 0x225   :  { %1401 = vmatmul.mubr.f32.gmra.mrb[50].mxu1 %v1018_v21  ;;  %2678 = vmatprep.subr.bf16.mxu1 %v2677_v24  ;;  %v968_v21 = vld [vmem:[#allocation11 + $0x190] sm:$0xff]  ;;  %v977_v24 = vld [vmem:[#allocation11 + $0x1d8] sm:$0xff] }
 0x226   :  { %2680 = vmatpush1.bf16.msra.mxu1 %v2679_v19  ;;  %1406 = vmatprep.mubr.f32.mxu1 %v1023_v25  ;;  %v964_v19 = vld [vmem:[#allocation11 + $0x170] sm:$0xff] }
 0x227   :  { %v761_v30 = vpop.f32.mrb[116].mxu0  ;;  %v976_v25 = vld [vmem:[#allocation11 + $0x1d0] sm:$0xff] }
 0x228   :  { %v763_v32 = vpop.f32.mrb[117].mxu0 }
 0x229   :  { %v765_v34 = vpop.f32.mrb[118].mxu0  ;;  %1407 = vmatmul.mubr.f32.gmra.mrb[52].mxu1 %v1022_v29  ;;  %v984_v29 = vld [vmem:[#allocation11 + $0x210] sm:$0xff] }
 0x22a   :  { %v2683_v35 = vpack.c.bf16 %v765_v34, %v761_v30  ;;  %v767_v36 = vpop.f32.mrb[119].mxu0  ;;  %1412 = vmatprep.mubr.f32.mxu1 %v1027_v31  ;;  %v989_v30 = vld [vmem:[#allocation11 + $0x238] sm:$0xff]  ;;  %v988_v31 = vld [vmem:[#allocation11 + $0x230] sm:$0xff] }
 0x22b   :  { %v2681_v38 = vpack.c.bf16 %v767_v36, %v763_v32  ;;  %v993_v32 = vld [vmem:[#allocation11 + $0x258] sm:$0xff] }
 0x22c   :  { %v2202_v34 = vld [vmem:[#allocation12 + $0x38] sm:$0xff] }
 0x22d   :  { %1413 = vmatmul.mubr.f32.gmra.mrb[54].mxu1 %v1026_v37  ;;  %2682 = vmatprep.subr.bf16.mxu1 %v2681_v38  ;;  %v2703_v36 = vpack.c.bf16 %v2202_v34, %v2201_v33  ;;  %v997_v37 = vld [vmem:[#allocation11 + $0x278] sm:$0xff]  ;;  %v996_v38 = vld [vmem:[#allocation11 + $0x270] sm:$0xff] }
 0x22e   :  { %2684 = vmatpush1.bf16.msra.mxu1 %v2683_v35  ;;  %1418 = vmatprep.mubr.f32.mxu1 %v1031_v39  ;;  %v992_v35 = vld [vmem:[#allocation11 + $0x250] sm:$0xff]  ;;  %v1001_v39 = vld [vmem:[#allocation11 + $0x298] sm:$0xff] }
 0x22f   :  { %v771_v41 = vpop.f32.mrb[120].mxu0  ;;  %2704 = vmatpush3.bf16.msra.mxu0 %v2703_v36 }
 0x230   :  { %v773_v43 = vpop.f32.mrb[121].mxu0  ;;  %2705 = vmatprep.subr.bf16.mxu0 %v3093_v22 }
 0x231   :  { %v775_v44 = vpop.f32.mrb[122].mxu0  ;;  %1419 = vmatmul.mubr.f32.gmra.mrb[56].mxu1 %v1030_v40  ;;  %v1176_v40 = vlaneseq }
 0x232   :  { %v2687_v45 = vpack.c.bf16 %v775_v44, %v771_v41  ;;  %v777_v46 = vpop.f32.mrb[123].mxu0  ;;  %1424 = vmatprep.mubr.f32.mxu1 %v1035_v42  ;;  %v1000_v41 = vld [vmem:[#allocation11 + $0x290] sm:$0xff]  ;;  %v1005_v42 = vld [vmem:[#allocation11 + $0x2b8] sm:$0xff]  ;;  %v1174_v44 = vld [vmem:[%s3501_s3] sm:$0x3] }
 0x233   :  { %v2685_v48 = vpack.c.bf16 %v777_v46, %v773_v43  ;;  %v1177_v43 = vshrl.u32 %v1176_v40, 7 }
 0x235   :  { %1425 = vmatmul.mubr.f32.gmra.mrb[58].mxu1 %v1034_v47  ;;  %2686 = vmatprep.subr.bf16.mxu1 %v2685_v48  ;;  %v1182_v46 = vsub.s32 1, %v1177_v43  ;;  %v1009_v47 = vld [vmem:[#allocation11 + $0x2d8] sm:$0xff] }
 0x236   :  { %2688 = vmatpush1.bf16.msra.mxu1 %v2687_v45  ;;  %1430 = vmatprep.mubr.f32.mxu1 %v1039_v49  ;;  %v1004_v45 = vld [vmem:[#allocation11 + $0x2b0] sm:$0xff] }
 0x237   :  { %v781_v51 = vpop.f32.mrb[124].mxu0  ;;  %v3232_v48 = vrot.slane %v1174_v44, %v1182_v46  ;;  %v1008_v49 = vld [vmem:[#allocation11 + $0x2d0] sm:$0xff] }
 0x238   :  { %v783_v53 = vpop.f32.mrb[125].mxu0 }
 0x239   :  { %v785_v54 = vpop.f32.mrb[126].mxu0  ;;  %1431 = vmatmul.mubr.f32.gmra.mrb[60].mxu1 %v1038_v50  ;;  %v1013_v50 = vld [vmem:[#allocation11 + $0x2f8] sm:$0xff] }
 0x23a   :  { %v2691_v55 = vpack.c.bf16 %v785_v54, %v781_v51  ;;  %v787_v56 = vpop.f32.mrb[127].mxu0  ;;  %1436 = vmatprep.mubr.f32.mxu1 %v1043_v52  ;;  %v1012_v51 = vld [vmem:[#allocation11 + $0x2f0] sm:$0xff]  ;;  %v1017_v52 = vld [vmem:[#allocation11 + $0x318] sm:$0xff]  ;;  %v2203_v54 = vld [vmem:[#allocation12 + $0x40] sm:$0xff] }
 0x23b   :  { %v2689_v58 = vpack.c.bf16 %v787_v56, %v783_v53  ;;  %v1016_v53 = vld [vmem:[#allocation11 + $0x310] sm:$0xff] }
 0x23d   :  { %1437 = vmatmul.mubr.f32.gmra.mrb[62].mxu1 %v1042_v57  ;;  %2690 = vmatprep.subr.bf16.mxu1 %v2689_v58  ;;  %v2205_v57 = vld [vmem:[#allocation12 + $0x50] sm:$0xff]  ;;  %v2206_v58 = vld [vmem:[#allocation12 + $0x58] sm:$0xff] }
 0x23e   :  { %2692 = vmatpush1.bf16.msra.mxu1 %v2691_v55  ;;  %1507 = vmatprep.mubr.f32.mxu1 %v921_v59  ;;  %v2204_v55 = vld [vmem:[#allocation12 + $0x48] sm:$0xff]  ;;  %v2709_v59 = vpack.c.bf16 %v2206_v58, %v2205_v57 }
 0x23f   :  { %2717 = vmatprep.subr.bf16.mxu1 %v3093_v22  ;;  %v2706_v56 = vpack.c.bf16 %v2204_v55, %v2203_v54 }
 0x241   :  { %1508 = vmatmul.mubr.f32.vlgmr.msra.gmra.mrb[0].mxu1 %v920_v60  ;;  %2707 = vmatpush3.bf16.msra.mxu0 %v2706_v56  ;;  %v2207_v60 = vld [vmem:[#allocation12 + $0x60] sm:$0xff] }
 0x242   :  { %1513 = vmatprep.mubr.f32.mxu1 %v925_v61  ;;  %2708 = vmatprep.subr.bf16.mxu0 %v3093_v22  ;;  %v2208_v61 = vld [vmem:[#allocation12 + $0x68] sm:$0xff] }
 0x245   :  { %1514 = vmatmul.mubr.f32.gmra.mrb[2].mxu1 %v924_v62  ;;  %2710 = vmatpush3.bf16.msra.mxu0 %v2709_v59  ;;  %v2712_v62 = vpack.c.bf16 %v2208_v61, %v2207_v60 }
 0x246   :  { %1519 = vmatprep.mubr.f32.mxu1 %v929_v63  ;;  %2711 = vmatprep.subr.bf16.mxu0 %v3093_v22 }
 0x249   :  { %1520 = vmatmul.mubr.f32.gmra.mrb[4].mxu1 %v928_v1  ;;  %2713 = vmatpush3.bf16.msra.mxu0 %v2712_v62 }
 0x24a   :  { %1525 = vmatprep.mubr.f32.mxu1 %v933_v2  ;;  %2714 = vmatprep.subr.bf16.mxu0 %v3093_v22 }
 0x24d   :  { %1526 = vmatmul.mubr.f32.gmra.mrb[6].mxu1 %v932_v3 }
 0x24e   :  { %1531 = vmatprep.mubr.f32.mxu1 %v937_v4 }
 0x251   :  { %1532 = vmatmul.mubr.f32.gmra.mrb[8].mxu1 %v936_v5 }
 0x252   :  { %1537 = vmatprep.mubr.f32.mxu1 %v941_v6 }
 0x255   :  { %1538 = vmatmul.mubr.f32.gmra.mrb[10].mxu1 %v940_v7 }
 0x256   :  { %1543 = vmatprep.mubr.f32.mxu1 %v945_v8 }
 0x259   :  { %1544 = vmatmul.mubr.f32.gmra.mrb[12].mxu1 %v944_v9 }
 0x25a   :  { %1549 = vmatprep.mubr.f32.mxu1 %v949_v10 }
 0x25d   :  { %1550 = vmatmul.mubr.f32.gmra.mrb[14].mxu1 %v948_v11 }
 0x25e   :  { %1555 = vmatprep.mubr.f32.mxu1 %v953_v12  ;;  %v1178_v12 = vsub.s32 0, %v1177_v43 }
 0x261   :  { %1556 = vmatmul.mubr.f32.gmra.mrb[16].mxu1 %v952_v13 }
 0x262   :  { %1561 = vmatprep.mubr.f32.mxu1 %v957_v14 }
 0x265   :  { %1562 = vmatmul.mubr.f32.gmra.mrb[18].mxu1 %v956_v15  ;;  %v3237_v15 = vrot.slane %v1174_v44, %v1178_v12 }
 0x266   :  { %1567 = vmatprep.mubr.f32.mxu1 %v961_v16 }
 0x269   :  { %1568 = vmatmul.mubr.f32.gmra.mrb[20].mxu1 %v960_v17 }
 0x26a   :  { %1573 = vmatprep.mubr.f32.mxu1 %v965_v18  ;;  %v3243_v18 = vstv %s3503_s5 }
 0x26d   :  { %1574 = vmatmul.mubr.f32.gmra.mrb[22].mxu1 %v964_v19 }
 0x26e   :  { %1579 = vmatprep.mubr.f32.mxu1 %v969_v20 }
 0x271   :  { %1580 = vmatmul.mubr.f32.gmra.mrb[24].mxu1 %v968_v21 }
 0x272   :  { %1585 = vmatprep.mubr.f32.mxu1 %v973_v0 }
 0x275   :  { %1586 = vmatmul.mubr.f32.gmra.mrb[26].mxu1 %v972_v23  ;;  %v2209_v23 = vld [vmem:[#allocation12 + $0x70] sm:$0xff] }
 0x276   :  { %1591 = vmatprep.mubr.f32.mxu1 %v977_v24  ;;  %v2210_v24 = vld [vmem:[#allocation12 + $0x78] sm:$0xff] }
 0x279   :  { %1592 = vmatmul.mubr.f32.gmra.mrb[28].mxu1 %v976_v25 }
 0x27a   :  { %1597 = vmatprep.mubr.f32.mxu1 %v981_v26 }
 0x27d   :  { %1598 = vmatmul.mubr.f32.gmra.mrb[30].mxu1 %v980_v27 }
 0x27e   :  { %1603 = vmatprep.mubr.f32.mxu1 %v985_v28  ;;  %v2715_v28 = vpack.c.bf16 %v2210_v24, %v2209_v23 }
 0x280   :  { %2716 = vmatpush3.bf16.msra.mxu0 %v2715_v28 }
 0x281   :  { %1604 = vmatmul.mubr.f32.gmra.mrb[32].mxu1 %v984_v29  ;;  %2753 = vmatprep.subr.bf16.mxu0 %v3093_v22 }
 0x282   :  { %1609 = vmatprep.mubr.f32.mxu1 %v989_v30  ;;  %v3095_v30 = vmov 0.0  }
 0x283   :  { %2562 = vmatprep.mubr.msk.f32.mxu0 %vm3094_vm2, %v3095_v30 }
 0x285   :  { %1610 = vmatmul.mubr.f32.gmra.mrb[34].mxu1 %v988_v31 }
 0x286   :  { %1615 = vmatprep.mubr.f32.mxu1 %v993_v32 }
 0x289   :  { %1616 = vmatmul.mubr.f32.gmra.mrb[36].mxu1 %v992_v35 }
 0x28a   :  { %1621 = vmatprep.mubr.f32.mxu1 %v997_v37 }
 0x28d   :  { %1622 = vmatmul.mubr.f32.gmra.mrb[38].mxu1 %v996_v38 }
 0x28e   :  { %1627 = vmatprep.mubr.f32.mxu1 %v1001_v39 }
 0x291   :  { %1628 = vmatmul.mubr.f32.gmra.mrb[40].mxu1 %v1000_v41 }
 0x292   :  { %1633 = vmatprep.mubr.f32.mxu1 %v1005_v42 }
 0x295   :  { %1634 = vmatmul.mubr.f32.gmra.mrb[42].mxu1 %v1004_v45 }
 0x296   :  { %1639 = vmatprep.mubr.f32.mxu1 %v1009_v47 }
 0x299   :  { %1640 = vmatmul.mubr.f32.gmra.mrb[44].mxu1 %v1008_v49 }
 0x29a   :  { %1645 = vmatprep.mubr.f32.mxu1 %v1013_v50 }
 0x29d   :  { %1646 = vmatmul.mubr.f32.gmra.mrb[46].mxu1 %v1012_v51 }
 0x29e   :  { %1651 = vmatprep.mubr.f32.mxu1 %v1017_v52 }
 0x2a1   :  { %1652 = vmatmul.mubr.f32.gmra.mrb[48].mxu1 %v1016_v53 }
 0x2f8   :  { %v1402_v63 = vpop.f32.mrb[50].mxu1 }
 0x2f9   :  { %v1404_v1 = vpop.f32.mrb[51].mxu1 }
 0x2fc   :  { %v1408_v2 = vpop.f32.mrb[52].mxu1 }
 0x2fd   :  { %v1410_v3 = vpop.f32.mrb[53].mxu1 }
 0x300   :  { %v1414_v4 = vpop.f32.mrb[54].mxu1 }
 0x301   :  { %v1416_v5 = vpop.f32.mrb[55].mxu1 }
 0x304   :  { %v1420_v6 = vpop.f32.mrb[56].mxu1 }
 0x305   :  { %v1422_v7 = vpop.f32.mrb[57].mxu1 }
 0x308   :  { %v1426_v8 = vpop.f32.mrb[58].mxu1 }
 0x309   :  { %v1428_v9 = vpop.f32.mrb[59].mxu1 }
 0x30c   :  { %v1432_v10 = vpop.f32.mrb[60].mxu1 }
 0x30d   :  { %v1434_v11 = vpop.f32.mrb[61].mxu1 }
 0x310   :  { %v1438_v13 = vpop.f32.mrb[62].mxu1 }
 0x311   :  { %v1440_v14 = vpop.f32.mrb[63].mxu1 }
 0x314   :  { %v1509_v16 = vpop.f32.mrb[0].mxu1 }
 0x315   :  { %v2789_v17 = vadd.f32 %v1509_v16, %v3237_v15  ;;  %v1511_v19 = vpop.f32.mrb[1].mxu1 }
 0x316   :  { %v2790_v20 = vadd.f32 %v1511_v19, %v3232_v48 }
 0x317   :  { %v1766_v21 = vmul.f32 %v2789_v17, %v3243_v18  ;;  %vm1701_vm0 = vcmp.gt.f32.partialorder %v2789_v17, 0.0 }
 0x318   :  { %v1515_v0 = vpop.f32.mrb[2].mxu1  ;;  %v1767_v25 = vmul.f32 %v2790_v20, %v3243_v18  ;;  %vm1702_vm1 = vcmp.gt.f32.partialorder %v2790_v20, 0.0 }
 0x319   :  { %v2791_v26 = vadd.f32 %v1515_v0, %v3237_v15  ;;  %v1517_v27 = vpop.f32.mrb[3].mxu1  ;;  %v1830_v34 = vsel %vm1701_vm0, %v2789_v17, %v1766_v21 }
 0x31a   :  { %v2792_v29 = vadd.f32 %v1517_v27, %v3232_v48  ;;  %v3254_v35 = vsel %vm1702_vm1, %v2790_v20, %v1767_v25 }
 0x31b   :  { %vm1703_vm3 = vcmp.gt.f32.partialorder %v2791_v26, 0.0  ;;  %v1768_v31 = vmul.f32 %v2791_v26, %v3243_v18 }
 0x31c   :  { %vm1704_vm4 = vcmp.gt.f32.partialorder %v2792_v29, 0.0  ;;  %v1769_v32 = vmul.f32 %v2792_v29, %v3243_v18  ;;  %v1521_v33 = vpop.f32.mrb[4].mxu1 }
 0x31d   :  { %v1832_v36 = vsel %vm1703_vm3, %v2791_v26, %v1768_v31  ;;  %v2793_v37 = vadd.f32 %v1521_v33, %v3237_v15  ;;  %v1523_v38 = vpop.f32.mrb[5].mxu1 }
 0x31e   :  { %v2151_v39 = vadd.f32 %v1832_v36, %v1830_v34  ;;  %v2718_v40 = vpack.c.bf16 %v1832_v36, %v1830_v34  ;;  %v3257_v41 = vsel %vm1704_vm4, %v2792_v29, %v1769_v32  ;;  %v2794_v42 = vadd.f32 %v1523_v38, %v3232_v48 }
 0x31f   :  { %v2754_v43 = vpack.c.bf16 %v3257_v41, %v3254_v35  ;;  %vm1705_vm5 = vcmp.gt.f32.partialorder %v2793_v37, 0.0  ;;  %v1770_v44 = vmul.f32 %v2793_v37, %v3243_v18 }
 0x320   :  { %v1527_v45 = vpop.f32.mrb[6].mxu1  ;;  %2719 = vmatpush1.bf16.xpose.msra.mxu1 %v2718_v40  ;;  %v1771_v47 = vmul.f32 %v2794_v42, %v3243_v18  ;;  %vm1706_vm6 = vcmp.gt.f32.partialorder %v2794_v42, 0.0 }
 0x321   :  { %v1834_v46 = vsel %vm1705_vm5, %v2793_v37, %v1770_v44  ;;  %v2795_v49 = vadd.f32 %v1527_v45, %v3237_v15  ;;  %v1529_v50 = vpop.f32.mrb[7].mxu1  ;;  %2720 = vmatprep.subr.bf16.mxu1 %v3093_v22 }
 0x322   :  { %v2152_v51 = vadd.f32 %v2151_v39, %v1834_v46  ;;  %v2796_v52 = vadd.f32 %v1529_v50, %v3232_v48  ;;  %v3269_v56 = vsel %vm1706_vm6, %v2794_v42, %v1771_v47 }
 0x323   :  { %vm1707_vm7 = vcmp.gt.f32.partialorder %v2795_v49, 0.0  ;;  %v1772_v53 = vmul.f32 %v2795_v49, %v3243_v18 }
 0x324   :  { %vm1708_vm8 = vcmp.gt.f32.partialorder %v2796_v52, 0.0  ;;  %v1773_v54 = vmul.f32 %v2796_v52, %v3243_v18  ;;  %v1533_v55 = vpop.f32.mrb[8].mxu1 }
 0x325   :  { %v1836_v57 = vsel %vm1707_vm7, %v2795_v49, %v1772_v53  ;;  %v2797_v58 = vadd.f32 %v1533_v55, %v3237_v15  ;;  %v1535_v59 = vpop.f32.mrb[9].mxu1 }
 0x326   :  { %v2153_v60 = vadd.f32 %v2152_v51, %v1836_v57  ;;  %v2721_v61 = vpack.c.bf16 %v1836_v57, %v1834_v46  ;;  %v3272_v62 = vsel %vm1708_vm8, %v2796_v52, %v1773_v54  ;;  %v2798_v63 = vadd.f32 %v1535_v59, %v3232_v48 }
 0x327   :  { %v2757_v1 = vpack.c.bf16 %v3272_v62, %v3269_v56  ;;  %vm1709_vm9 = vcmp.gt.f32.partialorder %v2797_v58, 0.0  ;;  %v1774_v2 = vmul.f32 %v2797_v58, %v3243_v18 }
 0x328   :  { %v1539_v3 = vpop.f32.mrb[10].mxu1  ;;  %2722 = vmatpush1.bf16.xpose.msra.mxu1 %v2721_v61  ;;  %v1775_v5 = vmul.f32 %v2798_v63, %v3243_v18  ;;  %vm1710_vm10 = vcmp.gt.f32.partialorder %v2798_v63, 0.0 }
 0x329   :  { %v1838_v4 = vsel %vm1709_vm9, %v2797_v58, %v1774_v2  ;;  %v2799_v6 = vadd.f32 %v1539_v3, %v3237_v15  ;;  %v1541_v7 = vpop.f32.mrb[11].mxu1  ;;  %2723 = vmatprep.subr.bf16.mxu1 %v3093_v22 }
 0x32a   :  { %v2154_v8 = vadd.f32 %v2153_v60, %v1838_v4  ;;  %v2800_v9 = vadd.f32 %v1541_v7, %v3232_v48  ;;  %v3284_v13 = vsel %vm1710_vm10, %v2798_v63, %v1775_v5 }
 0x32b   :  { %vm1711_vm11 = vcmp.gt.f32.partialorder %v2799_v6, 0.0  ;;  %v1776_v10 = vmul.f32 %v2799_v6, %v3243_v18 }
 0x32c   :  { %vm1712_vm12 = vcmp.gt.f32.partialorder %v2800_v9, 0.0  ;;  %v1777_v11 = vmul.f32 %v2800_v9, %v3243_v18  ;;  %v1545_v12 = vpop.f32.mrb[12].mxu1 }
 0x32d   :  { %v1840_v14 = vsel %vm1711_vm11, %v2799_v6, %v1776_v10  ;;  %v2801_v16 = vadd.f32 %v1545_v12, %v3237_v15  ;;  %v1547_v17 = vpop.f32.mrb[13].mxu1 }
 0x32e   :  { %v2155_v19 = vadd.f32 %v2154_v8, %v1840_v14  ;;  %v2724_v20 = vpack.c.bf16 %v1840_v14, %v1838_v4  ;;  %v3287_v21 = vsel %vm1712_vm12, %v2800_v9, %v1777_v11  ;;  %v2802_v0 = vadd.f32 %v1547_v17, %v3232_v48 }
 0x32f   :  { %v2760_v23 = vpack.c.bf16 %v3287_v21, %v3284_v13  ;;  %vm1713_vm13 = vcmp.gt.f32.partialorder %v2801_v16, 0.0  ;;  %v1778_v24 = vmul.f32 %v2801_v16, %v3243_v18 }
 0x330   :  { %v1551_v25 = vpop.f32.mrb[14].mxu1  ;;  %2725 = vmatpush1.bf16.xpose.msra.mxu1 %v2724_v20  ;;  %v1779_v27 = vmul.f32 %v2802_v0, %v3243_v18  ;;  %vm1714_vm14 = vcmp.gt.f32.partialorder %v2802_v0, 0.0 }
 0x331   :  { %v1842_v26 = vsel %vm1713_vm13, %v2801_v16, %v1778_v24  ;;  %v2803_v28 = vadd.f32 %v1551_v25, %v3237_v15  ;;  %v1553_v29 = vpop.f32.mrb[15].mxu1  ;;  %2726 = vmatprep.subr.bf16.mxu1 %v3093_v22 }
 0x332   :  { %v2156_v31 = vadd.f32 %v2155_v19, %v1842_v26  ;;  %v2804_v32 = vadd.f32 %v1553_v29, %v3232_v48  ;;  %v3299_v37 = vsel %vm1714_vm14, %v2802_v0, %v1779_v27 }
 0x333   :  { %vm1715_vm15 = vcmp.gt.f32.partialorder %v2803_v28, 0.0  ;;  %v1780_v33 = vmul.f32 %v2803_v28, %v3243_v18 }
 0x334   :  { %vm1716_vm0 = vcmp.gt.f32.partialorder %v2804_v32, 0.0  ;;  %v1781_v34 = vmul.f32 %v2804_v32, %v3243_v18  ;;  %v1557_v36 = vpop.f32.mrb[16].mxu1 }
 0x335   :  { %v1844_v38 = vsel %vm1715_vm15, %v2803_v28, %v1780_v33  ;;  %v2805_v39 = vadd.f32 %v1557_v36, %v3237_v15  ;;  %v1559_v40 = vpop.f32.mrb[17].mxu1 }
 0x336   :  { %v2157_v42 = vadd.f32 %v2156_v31, %v1844_v38  ;;  %v2727_v44 = vpack.c.bf16 %v1844_v38, %v1842_v26  ;;  %v3302_v45 = vsel %vm1716_vm0, %v2804_v32, %v1781_v34  ;;  %v2806_v46 = vadd.f32 %v1559_v40, %v3232_v48 }
 0x337   :  { %v2763_v47 = vpack.c.bf16 %v3302_v45, %v3299_v37  ;;  %vm1717_vm1 = vcmp.gt.f32.partialorder %v2805_v39, 0.0  ;;  %v1782_v49 = vmul.f32 %v2805_v39, %v3243_v18 }
 0x338   :  { %v1563_v50 = vpop.f32.mrb[18].mxu1  ;;  %2728 = vmatpush1.bf16.xpose.msra.mxu1 %v2727_v44  ;;  %v1783_v52 = vmul.f32 %v2806_v46, %v3243_v18  ;;  %vm1718_vm2 = vcmp.gt.f32.partialorder %v2806_v46, 0.0 }
 0x339   :  { %v1846_v51 = vsel %vm1717_vm1, %v2805_v39, %v1782_v49  ;;  %v2807_v53 = vadd.f32 %v1563_v50, %v3237_v15  ;;  %v1565_v54 = vpop.f32.mrb[19].mxu1  ;;  %2729 = vmatprep.subr.bf16.mxu1 %v3093_v22 }
 0x33a   :  { %v2158_v55 = vadd.f32 %v2157_v42, %v1846_v51  ;;  %v2808_v57 = vadd.f32 %v1565_v54, %v3232_v48  ;;  %v3314_v61 = vsel %vm1718_vm2, %v2806_v46, %v1783_v52 }
 0x33b   :  { %vm1719_vm3 = vcmp.gt.f32.partialorder %v2807_v53, 0.0  ;;  %v1784_v58 = vmul.f32 %v2807_v53, %v3243_v18 }
 0x33c   :  { %vm1720_vm4 = vcmp.gt.f32.partialorder %v2808_v57, 0.0  ;;  %v1785_v59 = vmul.f32 %v2808_v57, %v3243_v18  ;;  %v1569_v60 = vpop.f32.mrb[20].mxu1 }
 0x33d   :  { %v1848_v63 = vsel %vm1719_vm3, %v2807_v53, %v1784_v58  ;;  %v2809_v2 = vadd.f32 %v1569_v60, %v3237_v15  ;;  %v1571_v3 = vpop.f32.mrb[21].mxu1 }
 0x33e   :  { %v2159_v4 = vadd.f32 %v2158_v55, %v1848_v63  ;;  %v2730_v5 = vpack.c.bf16 %v1848_v63, %v1846_v51  ;;  %v3317_v6 = vsel %vm1720_vm4, %v2808_v57, %v1785_v59  ;;  %v2810_v7 = vadd.f32 %v1571_v3, %v3232_v48 }
 0x33f   :  { %v2766_v8 = vpack.c.bf16 %v3317_v6, %v3314_v61  ;;  %vm1721_vm5 = vcmp.gt.f32.partialorder %v2809_v2, 0.0  ;;  %v1786_v9 = vmul.f32 %v2809_v2, %v3243_v18 }
 0x340   :  { %v1575_v10 = vpop.f32.mrb[22].mxu1  ;;  %2731 = vmatpush1.bf16.xpose.msra.mxu1 %v2730_v5  ;;  %v1787_v12 = vmul.f32 %v2810_v7, %v3243_v18  ;;  %vm1722_vm6 = vcmp.gt.f32.partialorder %v2810_v7, 0.0 }
 0x341   :  { %v1850_v11 = vsel %vm1721_vm5, %v2809_v2, %v1786_v9  ;;  %v2811_v14 = vadd.f32 %v1575_v10, %v3237_v15  ;;  %v1577_v16 = vpop.f32.mrb[23].mxu1  ;;  %2732 = vmatprep.subr.bf16.mxu1 %v3093_v22 }
 0x342   :  { %v2160_v17 = vadd.f32 %v2159_v4, %v1850_v11  ;;  %v2812_v19 = vadd.f32 %v1577_v16, %v3232_v48  ;;  %v3329_v25 = vsel %vm1722_vm6, %v2810_v7, %v1787_v12 }
 0x343   :  { %vm1723_vm7 = vcmp.gt.f32.partialorder %v2811_v14, 0.0  ;;  %v1788_v20 = vmul.f32 %v2811_v14, %v3243_v18 }
 0x344   :  { %vm1724_vm8 = vcmp.gt.f32.partialorder %v2812_v19, 0.0  ;;  %v1789_v0 = vmul.f32 %v2812_v19, %v3243_v18  ;;  %v1581_v24 = vpop.f32.mrb[24].mxu1 }
 0x345   :  { %v1852_v26 = vsel %vm1723_vm7, %v2811_v14, %v1788_v20  ;;  %v2813_v27 = vadd.f32 %v1581_v24, %v3237_v15  ;;  %v1583_v28 = vpop.f32.mrb[25].mxu1 }
 0x346   :  { %v2161_v29 = vadd.f32 %v2160_v17, %v1852_v26  ;;  %v2733_v31 = vpack.c.bf16 %v1852_v26, %v1850_v11  ;;  %v3332_v32 = vsel %vm1724_vm8, %v2812_v19, %v1789_v0  ;;  %v2814_v33 = vadd.f32 %v1583_v28, %v3232_v48 }
 0x347   :  { %v2769_v34 = vpack.c.bf16 %v3332_v32, %v3329_v25  ;;  %vm1725_vm9 = vcmp.gt.f32.partialorder %v2813_v27, 0.0  ;;  %v1790_v36 = vmul.f32 %v2813_v27, %v3243_v18 }
 0x348   :  { %v1587_v38 = vpop.f32.mrb[26].mxu1  ;;  %2734 = vmatpush1.bf16.xpose.msra.mxu1 %v2733_v31  ;;  %v1791_v40 = vmul.f32 %v2814_v33, %v3243_v18  ;;  %vm1726_vm10 = vcmp.gt.f32.partialorder %v2814_v33, 0.0 }
 0x349   :  { %v1854_v39 = vsel %vm1725_vm9, %v2813_v27, %v1790_v36  ;;  %v2815_v42 = vadd.f32 %v1587_v38, %v3237_v15  ;;  %v1589_v44 = vpop.f32.mrb[27].mxu1  ;;  %2735 = vmatprep.subr.bf16.mxu1 %v3093_v22 }
 0x34a   :  { %v2162_v46 = vadd.f32 %v2161_v29, %v1854_v39  ;;  %v2816_v49 = vadd.f32 %v1589_v44, %v3232_v48  ;;  %v3344_v53 = vsel %vm1726_vm10, %v2814_v33, %v1791_v40 }
 0x34b   :  { %vm1727_vm11 = vcmp.gt.f32.partialorder %v2815_v42, 0.0  ;;  %v1792_v50 = vmul.f32 %v2815_v42, %v3243_v18 }
 0x34c   :  { %vm1728_vm12 = vcmp.gt.f32.partialorder %v2816_v49, 0.0  ;;  %v1793_v51 = vmul.f32 %v2816_v49, %v3243_v18  ;;  %v1593_v52 = vpop.f32.mrb[28].mxu1 }
 0x34d   :  { %v1856_v54 = vsel %vm1727_vm11, %v2815_v42, %v1792_v50  ;;  %v2817_v55 = vadd.f32 %v1593_v52, %v3237_v15  ;;  %v1595_v57 = vpop.f32.mrb[29].mxu1 }
 0x34e   :  { %v2163_v58 = vadd.f32 %v2162_v46, %v1856_v54  ;;  %v2736_v59 = vpack.c.bf16 %v1856_v54, %v1854_v39  ;;  %v3347_v60 = vsel %vm1728_vm12, %v2816_v49, %v1793_v51  ;;  %v2818_v63 = vadd.f32 %v1595_v57, %v3232_v48 }
 0x34f   :  { %v2772_v2 = vpack.c.bf16 %v3347_v60, %v3344_v53  ;;  %vm1729_vm13 = vcmp.gt.f32.partialorder %v2817_v55, 0.0  ;;  %v1794_v3 = vmul.f32 %v2817_v55, %v3243_v18 }
 0x350   :  { %v1599_v4 = vpop.f32.mrb[30].mxu1  ;;  %2737 = vmatpush1.bf16.xpose.msra.mxu1 %v2736_v59  ;;  %v1795_v7 = vmul.f32 %v2818_v63, %v3243_v18  ;;  %vm1730_vm14 = vcmp.gt.f32.partialorder %v2818_v63, 0.0 }
 0x351   :  { %v1858_v5 = vsel %vm1729_vm13, %v2817_v55, %v1794_v3  ;;  %v2819_v9 = vadd.f32 %v1599_v4, %v3237_v15  ;;  %v1601_v10 = vpop.f32.mrb[31].mxu1  ;;  %2738 = vmatprep.subr.bf16.mxu1 %v3093_v22 }
 0x352   :  { %v2164_v11 = vadd.f32 %v2163_v58, %v1858_v5  ;;  %v2820_v12 = vadd.f32 %v1601_v10, %v3232_v48  ;;  %v3359_v19 = vsel %vm1730_vm14, %v2818_v63, %v1795_v7 }
 0x353   :  { %vm1731_vm15 = vcmp.gt.f32.partialorder %v2819_v9, 0.0  ;;  %v1796_v14 = vmul.f32 %v2819_v9, %v3243_v18 }
 0x354   :  { %vm1732_vm0 = vcmp.gt.f32.partialorder %v2820_v12, 0.0  ;;  %v1797_v16 = vmul.f32 %v2820_v12, %v3243_v18  ;;  %v1605_v17 = vpop.f32.mrb[32].mxu1 }
 0x355   :  { %v1860_v20 = vsel %vm1731_vm15, %v2819_v9, %v1796_v14  ;;  %v2821_v0 = vadd.f32 %v1605_v17, %v3237_v15  ;;  %v1607_v24 = vpop.f32.mrb[33].mxu1 }
 0x356   :  { %v2165_v26 = vadd.f32 %v2164_v11, %v1860_v20  ;;  %v2739_v27 = vpack.c.bf16 %v1860_v20, %v1858_v5  ;;  %v3362_v28 = vsel %vm1732_vm0, %v2820_v12, %v1797_v16  ;;  %v2822_v29 = vadd.f32 %v1607_v24, %v3232_v48 }
 0x357   :  { %v2775_v31 = vpack.c.bf16 %v3362_v28, %v3359_v19  ;;  %vm1733_vm1 = vcmp.gt.f32.partialorder %v2821_v0, 0.0  ;;  %v1798_v33 = vmul.f32 %v2821_v0, %v3243_v18 }
 0x358   :  { %v1611_v36 = vpop.f32.mrb[34].mxu1  ;;  %2740 = vmatpush1.bf16.xpose.msra.mxu1 %v2739_v27  ;;  %v1799_v39 = vmul.f32 %v2822_v29, %v3243_v18  ;;  %vm1734_vm2 = vcmp.gt.f32.partialorder %v2822_v29, 0.0 }
 0x359   :  { %v1862_v38 = vsel %vm1733_vm1, %v2821_v0, %v1798_v33  ;;  %v2823_v40 = vadd.f32 %v1611_v36, %v3237_v15  ;;  %v1613_v42 = vpop.f32.mrb[35].mxu1  ;;  %2741 = vmatprep.subr.bf16.mxu1 %v3093_v22 }
 0x35a   :  { %v2166_v44 = vadd.f32 %v2165_v26, %v1862_v38  ;;  %v2824_v46 = vadd.f32 %v1613_v42, %v3232_v48  ;;  %v3374_v52 = vsel %vm1734_vm2, %v2822_v29, %v1799_v39 }
 0x35b   :  { %vm1735_vm3 = vcmp.gt.f32.partialorder %v2823_v40, 0.0  ;;  %v1800_v49 = vmul.f32 %v2823_v40, %v3243_v18 }
 0x35c   :  { %vm1736_vm4 = vcmp.gt.f32.partialorder %v2824_v46, 0.0  ;;  %v1801_v50 = vmul.f32 %v2824_v46, %v3243_v18  ;;  %v1617_v51 = vpop.f32.mrb[36].mxu1 }
 0x35d   :  { %v1864_v54 = vsel %vm1735_vm3, %v2823_v40, %v1800_v49  ;;  %v2825_v55 = vadd.f32 %v1617_v51, %v3237_v15  ;;  %v1619_v57 = vpop.f32.mrb[37].mxu1  ;;  %vm2431_vm3 = vcmask 1040384  }
 0x35e   :  { %v2167_v58 = vadd.f32 %v2166_v44, %v1864_v54  ;;  %v2742_v59 = vpack.c.bf16 %v1864_v54, %v1862_v38  ;;  %v3377_v63 = vsel %vm1736_vm4, %v2824_v46, %v1801_v50  ;;  %v2826_v3 = vadd.f32 %v1619_v57, %v3232_v48 }
 0x35f   :  { %v2778_v4 = vpack.c.bf16 %v3377_v63, %v3374_v52  ;;  %vm1737_vm5 = vcmp.gt.f32.partialorder %v2825_v55, 0.0  ;;  %v1802_v5 = vmul.f32 %v2825_v55, %v3243_v18 }
 0x360   :  { %v1623_v7 = vpop.f32.mrb[38].mxu1  ;;  %2743 = vmatpush1.bf16.xpose.msra.mxu1 %v2742_v59  ;;  %v1803_v10 = vmul.f32 %v2826_v3, %v3243_v18  ;;  %vm1738_vm6 = vcmp.gt.f32.partialorder %v2826_v3, 0.0 }
 0x361   :  { %v1866_v9 = vsel %vm1737_vm5, %v2825_v55, %v1802_v5  ;;  %v2827_v11 = vadd.f32 %v1623_v7, %v3237_v15  ;;  %v1625_v12 = vpop.f32.mrb[39].mxu1  ;;  %2744 = vmatprep.subr.bf16.mxu1 %v3093_v22 }
 0x362   :  { %v2168_v14 = vadd.f32 %v2167_v58, %v1866_v9  ;;  %v2828_v16 = vadd.f32 %v1625_v12, %v3232_v48  ;;  %v3389_v24 = vsel %vm1738_vm6, %v2826_v3, %v1803_v10 }
 0x363   :  { %vm1739_vm7 = vcmp.gt.f32.partialorder %v2827_v11, 0.0  ;;  %v1804_v17 = vmul.f32 %v2827_v11, %v3243_v18 }
 0x364   :  { %vm1740_vm8 = vcmp.gt.f32.partialorder %v2828_v16, 0.0  ;;  %v1805_v20 = vmul.f32 %v2828_v16, %v3243_v18  ;;  %v1629_v0 = vpop.f32.mrb[40].mxu1 }
 0x365   :  { %v1868_v26 = vsel %vm1739_vm7, %v2827_v11, %v1804_v17  ;;  %v2829_v27 = vadd.f32 %v1629_v0, %v3237_v15  ;;  %v1631_v29 = vpop.f32.mrb[41].mxu1 }
 0x366   :  { %v2169_v33 = vadd.f32 %v2168_v14, %v1868_v26  ;;  %v2745_v36 = vpack.c.bf16 %v1868_v26, %v1866_v9  ;;  %v3392_v38 = vsel %vm1740_vm8, %v2828_v16, %v1805_v20  ;;  %v2830_v39 = vadd.f32 %v1631_v29, %v3232_v48 }
 0x367   :  { %v2781_v40 = vpack.c.bf16 %v3392_v38, %v3389_v24  ;;  %vm1741_vm9 = vcmp.gt.f32.partialorder %v2829_v27, 0.0  ;;  %v1806_v42 = vmul.f32 %v2829_v27, %v3243_v18 }
 0x368   :  { %v1635_v44 = vpop.f32.mrb[42].mxu1  ;;  %2746 = vmatpush1.bf16.xpose.msra.mxu1 %v2745_v36  ;;  %v1807_v49 = vmul.f32 %v2830_v39, %v3243_v18  ;;  %vm1742_vm10 = vcmp.gt.f32.partialorder %v2830_v39, 0.0 }
 0x369   :  { %v1870_v46 = vsel %vm1741_vm9, %v2829_v27, %v1806_v42  ;;  %v2831_v50 = vadd.f32 %v1635_v44, %v3237_v15  ;;  %v1637_v51 = vpop.f32.mrb[43].mxu1  ;;  %2747 = vmatprep.subr.bf16.mxu1 %v3093_v22 }
 0x36a   :  { %v2170_v54 = vadd.f32 %v2169_v33, %v1870_v46  ;;  %v2832_v55 = vadd.f32 %v1637_v51, %v3232_v48  ;;  %v3404_v3 = vsel %vm1742_vm10, %v2830_v39, %v1807_v49 }
 0x36b   :  { %vm1743_vm11 = vcmp.gt.f32.partialorder %v2831_v50, 0.0  ;;  %v1808_v57 = vmul.f32 %v2831_v50, %v3243_v18 }
 0x36c   :  { %vm1744_vm12 = vcmp.gt.f32.partialorder %v2832_v55, 0.0  ;;  %v1809_v58 = vmul.f32 %v2832_v55, %v3243_v18  ;;  %v1641_v59 = vpop.f32.mrb[44].mxu1 }
 0x36d   :  { %v1872_v5 = vsel %vm1743_vm11, %v2831_v50, %v1808_v57  ;;  %v2833_v7 = vadd.f32 %v1641_v59, %v3237_v15  ;;  %v1643_v9 = vpop.f32.mrb[45].mxu1 }
 0x36e   :  { %v2171_v10 = vadd.f32 %v2170_v54, %v1872_v5  ;;  %v2748_v11 = vpack.c.bf16 %v1872_v5, %v1870_v46  ;;  %v3407_v12 = vsel %vm1744_vm12, %v2832_v55, %v1809_v58  ;;  %v2834_v14 = vadd.f32 %v1643_v9, %v3232_v48 }
 0x36f   :  { %v2784_v16 = vpack.c.bf16 %v3407_v12, %v3404_v3  ;;  %vm1745_vm13 = vcmp.gt.f32.partialorder %v2833_v7, 0.0  ;;  %v1810_v17 = vmul.f32 %v2833_v7, %v3243_v18 }
 0x370   :  { %v1647_v20 = vpop.f32.mrb[46].mxu1  ;;  %2749 = vmatpush1.bf16.xpose.msra.mxu1 %v2748_v11  ;;  %v1811_v33 = vmul.f32 %v2834_v14, %v3243_v18  ;;  %vm1746_vm14 = vcmp.gt.f32.partialorder %v2834_v14, 0.0 }
 0x371   :  { %v1874_v0 = vsel %vm1745_vm13, %v2833_v7, %v1810_v17  ;;  %v2835_v26 = vadd.f32 %v1647_v20, %v3237_v15  ;;  %v1649_v27 = vpop.f32.mrb[47].mxu1  ;;  %2750 = vmatprep.subr.bf16.mxu1 %v3093_v22  ;;  %v1021_v17 = vld [vmem:[#allocation11 + $0x338] sm:$0xff]  ;;  %v1020_v20 = vld [vmem:[#allocation11 + $0x330] sm:$0xff] }
 0x372   :  { %v2172_v29 = vadd.f32 %v2171_v10, %v1874_v0  ;;  %v2836_v36 = vadd.f32 %v1649_v27, %v3232_v48  ;;  %v3422_v51 = vsel %vm1746_vm14, %v2834_v14, %v1811_v33  ;;  %1657 = vmatprep.mubr.f32.mxu1 %v1021_v17  ;;  %v1029_v33 = vld [vmem:[#allocation11 + $0x378] sm:$0xff] }
 0x373   :  { %vm1747_vm15 = vcmp.gt.f32.partialorder %v2835_v26, 0.0  ;;  %v1812_v39 = vmul.f32 %v2835_v26, %v3243_v18  ;;  %1658 = vmatmul.mubr.f32.gmra.mrb[64].mxu1 %v1020_v20 }
 0x374   :  { %vm1748_vm0 = vcmp.gt.f32.partialorder %v2836_v36, 0.0  ;;  %v1813_v42 = vmul.f32 %v2836_v36, %v3243_v18  ;;  %v1653_v44 = vpop.f32.mrb[48].mxu1 }
 0x375   :  { %v1876_v46 = vsel %vm1747_vm15, %v2835_v26, %v1812_v39  ;;  %v2837_v49 = vadd.f32 %v1653_v44, %v3237_v15  ;;  %v3420_v50 = vpop.f32.mrb[49].mxu1  ;;  %v1028_v39 = vld [vmem:[#allocation11 + $0x370] sm:$0xff] }
 0x376   :  { %v2173_v54 = vadd.f32 %v2172_v29, %v1876_v46  ;;  %v2751_v55 = vpack.c.bf16 %v1876_v46, %v1874_v0  ;;  %v3424_v57 = vsel %vm1748_vm0, %v2836_v36, %v1813_v42  ;;  %v1025_v0 = vld [vmem:[#allocation11 + $0x358] sm:$0xff]  ;;  %v1024_v29 = vld [vmem:[#allocation11 + $0x350] sm:$0xff]  ;;  %v2838_v35 = vadd.f32 %v3420_v50, %v3232_v48 }
 0x377   :  { %v2787_v58 = vpack.c.bf16 %v3424_v57, %v3422_v51  ;;  %vm1749_vm1 = vcmp.gt.f32.partialorder %v2837_v49, 0.0  ;;  %v1814_v59 = vmul.f32 %v2837_v49, %v3243_v18  ;;  %1663 = vmatprep.mubr.f32.mxu1 %v1025_v0  ;;  %v1033_v42 = vld [vmem:[#allocation11 + $0x398] sm:$0xff]  ;;  %v1032_v44 = vld [vmem:[#allocation11 + $0x390] sm:$0xff] }
 0x378   :  { %2752 = vmatpush1.bf16.xpose.msra.mxu1 %v2751_v55  ;;  %v1037_v46 = vld [vmem:[#allocation11 + $0x3b8] sm:$0xff]  ;;  %v1815_v41 = vmul.f32 %v2838_v35, %v3243_v18  ;;  %vm1750_vm2 = vcmp.gt.f32.partialorder %v2838_v35, 0.0  ;;  %v2282_v18 = vstv %s3504_s6 }
 0x379   :  { %2331 = vmatprep.subr.mxu1 %v3095_v30  ;;  %v1878_v5 = vsel %vm1749_vm1, %v2837_v49, %v1814_v59  ;;  %1664 = vmatmul.mubr.f32.gmra.mrb[66].mxu1 %v1024_v29  ;;  %v1036_v49 = vld [vmem:[#allocation11 + $0x3b0] sm:$0xff] }
 0x37a   :  { %v2174_v7 = vadd.f32 %v2173_v54, %v1878_v5  ;;  %1669 = vmatprep.mubr.f32.mxu1 %v1029_v33  ;;  %v1041_v54 = vld [vmem:[#allocation11 + $0x3d8] sm:$0xff] }
 0x37c   :  { %v2182_v15 = vrot.slane %v2174_v7, 4 }
 0x37d   :  { %1670 = vmatmul.mubr.f32.gmra.mrb[68].mxu1 %v1028_v39 }
 0x37e   :  { %v2183_v9 = vadd.f32 %v2182_v15, %v2174_v7  ;;  %1675 = vmatprep.mubr.f32.mxu1 %v1033_v42  ;;  %v1045_v7 = vld [vmem:[#allocation11 + $0x3f8] sm:$0xff]  ;;  %v1044_v15 = vld [vmem:[#allocation11 + $0x3f0] sm:$0xff] }
 0x380   :  { %v2184_v10 = vrot.slane %v2183_v9, 2  ;;  %2332 = vmatpush1.xpose.msra.mxu1 %v1878_v5  ;;  %v1040_v5 = vld [vmem:[#allocation11 + $0x3d0] sm:$0xff] }
 0x381   :  { %1676 = vmatmul.mubr.f32.gmra.mrb[70].mxu1 %v1032_v44 }
 0x382   :  { %v2185_v11 = vadd.f32 %v2184_v10, %v2183_v9  ;;  %1681 = vmatprep.mubr.f32.mxu1 %v1037_v46 }
 0x384   :  { %v2186_v14 = vrot.slane %v2185_v11, 1 }
 0x385   :  { %1682 = vmatmul.mubr.f32.gmra.mrb[72].mxu1 %v1036_v49 }
 0x386   :  { %v2187_v26 = vadd.f32 %v2186_v14, %v2185_v11  ;;  %1687 = vmatprep.mubr.f32.mxu1 %v1041_v54 }
 0x388   :  { %v2511_v27 = vmul.f32 -0.005, %v2187_v26 }
 0x389   :  { %1688 = vmatmul.mubr.f32.gmra.mrb[74].mxu1 %v1040_v5 }
 0x38a   :  { %v2190_v36 = vmul.f32 1.442695, %v2511_v27  ;;  %1693 = vmatprep.mubr.f32.mxu1 %v1045_v7 }
 0x38c   :  { %2960 = vpow2.f32 %v2190_v36 }
 0x38d   :  { %1694 = vmatmul.mubr.f32.gmra.mrb[76].mxu1 %v1044_v15 }
 0x38e   :  { %2347 = vmatprep.mubr.f32.mxu1 %v3095_v30 }
 0x396   :  { %v2961_v55 = vpop.eup %2960 }
 0x397   :  { %v2192_v59 = vadd.f32 1.0, %v2961_v55 }
 0x399   :  { %2962 = vrcp.f32 %v2192_v59 }
 0x3a3   :  { %v2963_v9 = vpop.eup %2962 }
 0x3a4   :  { %2563 = vmatmul.mubr.f32.vlgmr.msra.gmra.mrb[128].mxu0 %v2963_v9 }
 0x3a5   :  { %2755 = vmatpush1.bf16.xpose.msra.mxu0 %v2754_v43  ;;  %2418 = vmatprep.mubr.f32.mxu0 %v3095_v30  ;;  %v1879_v43 = vsel %vm1750_vm2, %v2838_v35, %v1815_v41 }
 0x3a6   :  { %2756 = vmatprep.subr.bf16.mxu0 %v3093_v22 }
 0x3ad   :  { %2758 = vmatpush1.bf16.xpose.msra.mxu0 %v2757_v1 }
 0x3ae   :  { %2759 = vmatprep.subr.bf16.mxu0 %v3093_v22 }
 0x3b5   :  { %2761 = vmatpush1.bf16.xpose.msra.mxu0 %v2760_v23 }
 0x3b6   :  { %2762 = vmatprep.subr.bf16.mxu0 %v3093_v22 }
 0x3bd   :  { %2764 = vmatpush1.bf16.xpose.msra.mxu0 %v2763_v47 }
 0x3be   :  { %2765 = vmatprep.subr.bf16.mxu0 %v3093_v22 }
 0x3c5   :  { %2767 = vmatpush1.bf16.xpose.msra.mxu0 %v2766_v8 }
 0x3c6   :  { %2768 = vmatprep.subr.bf16.mxu0 %v3093_v22 }
 0x3cd   :  { %2770 = vmatpush1.bf16.xpose.msra.mxu0 %v2769_v34 }
 0x3ce   :  { %2771 = vmatprep.subr.bf16.mxu0 %v3093_v22 }
 0x3d5   :  { %2773 = vmatpush1.bf16.xpose.msra.mxu0 %v2772_v2 }
 0x3d6   :  { %2774 = vmatprep.subr.bf16.mxu0 %v3093_v22 }
 0x3dd   :  { %2776 = vmatpush1.bf16.xpose.msra.mxu0 %v2775_v31 }
 0x3de   :  { %2777 = vmatprep.subr.bf16.mxu0 %v3093_v22 }
 0x3e5   :  { %2779 = vmatpush1.bf16.xpose.msra.mxu0 %v2778_v4 }
 0x3e6   :  { %2780 = vmatprep.subr.bf16.mxu0 %v3093_v22 }
 0x3ed   :  { %2782 = vmatpush1.bf16.xpose.msra.mxu0 %v2781_v40 }
 0x3ee   :  { %2783 = vmatprep.subr.bf16.mxu0 %v3093_v22 }
 0x3f5   :  { %2785 = vmatpush1.bf16.xpose.msra.mxu0 %v2784_v16 }
 0x3f6   :  { %2786 = vmatprep.subr.bf16.mxu0 %v3093_v22 }
 0x3fd   :  { %2788 = vmatpush1.bf16.xpose.msra.mxu0 %v2787_v58 }
 0x3fe   :  { %2402 = vmatprep.subr.mxu0 %v3095_v30 }
 0x405   :  { %2403 = vmatpush1.xpose.msra.mxu0 %v1879_v43 }
 0x446   :  { %v1659_v56 = vpop.f32.mrb[64].mxu1 }
 0x447   :  { %v1661_v62 = vpop.f32.mrb[65].mxu1 }
 0x44c   :  { %v1665_v1 = vpop.f32.mrb[66].mxu1 }
 0x44d   :  { %v1667_v13 = vpop.f32.mrb[67].mxu1 }
 0x450   :  { %v1671_v21 = vpop.f32.mrb[68].mxu1 }
 0x451   :  { %v1673_v22 = vpop.f32.mrb[69].mxu1 }
 0x454   :  { %v1677_v23 = vpop.f32.mrb[70].mxu1 }
 0x455   :  { %v1679_v37 = vpop.f32.mrb[71].mxu1 }
 0x458   :  { %v1683_v48 = vpop.f32.mrb[72].mxu1 }
 0x459   :  { %v1685_v45 = vpop.f32.mrb[73].mxu1 }
 0x45c   :  { %v1689_v47 = vpop.f32.mrb[74].mxu1 }
 0x45d   :  { %v1691_v61 = vpop.f32.mrb[75].mxu1 }
 0x460   :  { %v1695_v6 = vpop.f32.mrb[76].mxu1 }
 0x461   :  { %v1697_v8 = vpop.f32.mrb[77].mxu1 }
 0x477   :  { %v2277_v30 = vpop.f32.mrb[128].mxu0 }
 0x478   :  { %v2564_v25 = vpop.f32.mrb[129].mxu0  ;;  %2348 = vmatmul.mubr.f32.vlgmr.msra.gmra.mrb[78].mxu1 %v2277_v30  ;;  %2419 = vmatmul.mubr.f32.vlgmr.msra.gmra.mrb[130].mxu0 %v2277_v30 }
 0x54b   :  { %v2349_v32 = vpop.f32.mrb[78].mxu1  ;;  %v2420_v34 = vpop.f32.mrb[130].mxu0 }
 0x54c   :  { %v2421_v53 = vadd.f32 %v2420_v34, %v2282_v18  ;;  %v2351_v60 = vpop.f32.mrb[79].mxu1  ;;  %v2422_v2 = vpop.f32.mrb[131].mxu0  ;;  %v2350_v28 = vadd.f32 %v2349_v32, %v2282_v18 }
 0x54d   :  { %v2423_v19 = vadd.f32 %v2422_v2, %v2282_v18  ;;  %v2352_v52 = vadd.f32 %v2351_v60, %v2282_v18 }
 0x54e   :  { %v2427_v31 = vrot.slane %v2421_v53, 7 }
 0x54f   :  { %v2428_v63 = vrot.slane %v2423_v19, 7 }
 0x550   :  { %v2432_v4 = vsel %vm2431_vm3, %v2350_v28, %v2427_v31 }
 0x551   :  { %v2433_v24 = vsel %vm2431_vm3, %v2352_v52, %v2428_v63 }
 0x552   :  { %v2436_v38 = vcombine.low %v2432_v4, %v2433_v24 }
 0x554   :  { %2512 = vst.sshfl [vmem:[#allocation14] sm:$0x33 pattern:$0x76325410] %v2436_v38 }
 0x555   :  { %3063 = shalt.err (!%p3060_p8)
}
 0x556   :  { %s3064_s14 = scalar_lea.hbm %s3505_s7, 64 }
 0x557   :  { %p3065_p9 = scmp.ne.s32.totalorder %s3505_s7, %s3064_s14  ;;  %p3068_p10 = scmp.lt.u32.totalorder %s3064_s14, %s3505_s7 }
 0x559   :  { %p3070_p11 = pnand %p3068_p10, %p3065_p9 }
 0x55b   :  { %3073 = shalt.err (!%p3070_p11)
}
 0x55c   :  { %2455 = dma.vmem_to_hbm [thread:$0]  %s2453_s9, 64, %s3505_s7, [#allocation8]  }
 0x55d   :  { %3080 = dma.done.wait [#allocation8], 64  }
 0x55e   :  { %3081 = vsyncadd [#allocation8], 4294967232 }
 0x55f   :  { %2459 = vsyncpa [#allocation7], 1 }
 0x560   :  { %2460 = vsyncpa [#allocation10], 1 }
 0x561   :  { %2461 = vsyncpa [#allocation13], 1 }
 0x562   :  { %2462 = vsyncpa [#allocation8], 1 }

</bundles_post_ra>
